<compile_context>
chip_gen: v5e
topology: v5e:2x2
jax: 0.10.0
libtpu: 0.0.40
codegen_flags: <defaults>
</compile_context>

<pallas_src>
import functools

import jax
import jax.numpy as jnp
from jax.experimental import pallas as pl
from jax.experimental.pallas import tpu as pltpu


def _bottleneck_kernel(xp_ref, w1_ref, w2_ref, w3_ref, b1_ref, b2_ref, b3_ref,
                       o_ref, hpad_ref, *, H, TH, W):
    Cin = xp_ref.shape[-1]
    Cb = w1_ref.shape[1]
    Cout = w3_ref.shape[1]

    i = pl.program_id(1)
    r0 = pl.multiple_of(i * TH, TH)          # window start (padded-x row coords)

    # (TH+2)-row window of the zero-padded input: covers this tile + 1-row halo.
    xwin = xp_ref[0, pl.ds(r0, TH + 2), :, :]                 # (TH+2, W, Cin) f32

    # ---- conv1 (1x1, BN scale folded into weights) + bias + ReLU ----
    x2d = xwin.reshape((TH + 2) * W, Cin).astype(jnp.bfloat16)
    h1 = jnp.dot(x2d, w1_ref[...], preferred_element_type=jnp.float32)
    h1 = jnp.maximum(h1 + b1_ref[...], 0.0).reshape(TH + 2, W, Cb)

    # Halo rows that fall outside the image correspond to conv2 zero-padding of
    # h -> force them to exactly zero (bias/ReLU would otherwise leak in).
    l = jax.lax.broadcasted_iota(jnp.int32, (TH + 2, 1, 1), 0)
    g = l + (r0 - 1)                                          # h-row in image coords
    h1 = jnp.where((g >= 0) & (g < H), h1, 0.0)

    # ---- halo scratch (TH+2, W+2, Cb): zero W-borders, h1 in the interior ----
    zcol = jnp.zeros((TH + 2, 1, Cb), jnp.float32)
    hpad_ref[:, 0:1, :] = zcol
    hpad_ref[:, W + 1:W + 2, :] = zcol
    hpad_ref[:, 1:W + 1, :] = h1

    # ---- conv2 (3x3, stride 1) as ONE matmul over im2col patches (K = 9*Cb) ----
    taps = [hpad_ref[ky:ky + TH, kx:kx + W, :].astype(jnp.bfloat16)
            for ky in range(3) for kx in range(3)]
    patch = jnp.concatenate(taps, axis=-1).reshape(TH * W, 9 * Cb)
    h2 = jnp.dot(patch, w2_ref[...], preferred_element_type=jnp.float32)
    h2 = jnp.maximum(h2 + b2_ref[...], 0.0).astype(jnp.bfloat16)

    # ---- conv3 (1x1) + bias + identity shortcut + ReLU (all f32) ----
    h3 = jnp.dot(h2, w3_ref[...], preferred_element_type=jnp.float32)
    shortcut = xwin[1:TH + 1].reshape(TH * W, Cin)            # f32 residual
    out = jnp.maximum(h3 + b3_ref[...] + shortcut, 0.0)
    o_ref[0] = out.reshape(TH, W, Cout).astype(o_ref.dtype)


def bottleneck_block(x, params, row_tile=None):
    """x: (N, H, W, Cin) NHWC.  params: (w1, w2, w3, s1, b1, s2, b2, s3, b3)."""
    w1, w2, w3, s1, b1, s2, b2, s3, b3 = params
    N, H, W, Cin = x.shape
    Cb = w1.shape[1]
    Cout = w3.shape[1]
    assert Cin == Cout, "identity shortcut requires in_ch == 4*bottleneck_ch"

    # Row-tile size: multiple of 8 that divides H.  (On v7x, keep TH roughly
    # half of what v6e/v5e would use to respect the 64 MiB VMEM budget.)
    if row_tile is None:
        row_tile = 8 if H % 8 == 0 else H
    assert H % row_tile == 0
    TH = row_tile

    # Fold BN scales into conv weights (output-channel axis); bf16 for the MXU.
    w1b = (w1 * s1).astype(jnp.bfloat16)                                # (Cin, Cb)
    w2b = (w2 * s2.reshape(1, 1, 1, Cb)).reshape(9 * Cb, Cb).astype(jnp.bfloat16)
    w3b = (w3 * s3).astype(jnp.bfloat16)                                # (Cb, Cout)
    b1f = b1.astype(jnp.float32)
    b2f = b2.astype(jnp.float32)
    b3f = b3.astype(jnp.float32)

    # Zero-pad H by one row on each side so every tile's halo is an in-bounds
    # dynamic slice (no clamping / special-casing inside the kernel).
    xp = jnp.pad(x, ((0, 0), (1, 1), (0, 0), (0, 0)))

    kernel = functools.partial(_bottleneck_kernel, H=H, TH=TH, W=W)
    rep2 = lambda shape: pl.BlockSpec(shape, lambda n, i: (0, 0))

    return pl.pallas_call(
        kernel,
        out_shape=jax.ShapeDtypeStruct((N, H, W, Cout), x.dtype),
        grid=(N, H // TH),
        in_specs=[
            # Full padded image per n; index constant in i -> no re-DMA per tile.
            pl.BlockSpec((1, H + 2, W, Cin), lambda n, i: (n, 0, 0, 0)),
            rep2(w1b.shape), rep2(w2b.shape), rep2(w3b.shape),
            rep2(b1f.shape), rep2(b2f.shape), rep2(b3f.shape),
        ],
        out_specs=pl.BlockSpec((1, TH, W, Cout), lambda n, i: (n, i, 0, 0)),
        scratch_shapes=[pltpu.VMEM((TH + 2, W + 2, Cb), jnp.float32)],
        compiler_params=pltpu.CompilerParams(
            dimension_semantics=("parallel", "arbitrary"),
            vmem_limit_bytes=64 * 1024 * 1024),
    )(xp, w1b, w2b, w3b, b1f, b2f, b3f)


def init_params(key, in_ch, bottleneck_ch, eps=1e-5):
    out_ch = bottleneck_ch * 4
    ks = jax.random.split(key, 15)
    w1 = 0.1 * jax.random.normal(ks[0], (in_ch, bottleneck_ch), jnp.float32)
    w2 = 0.1 * jax.random.normal(ks[1], (3, 3, bottleneck_ch, bottleneck_ch),
                                 jnp.float32)
    w3 = 0.1 * jax.random.normal(ks[2], (bottleneck_ch, out_ch), jnp.float32)

    def bn(kg, kb, km, kv, c):
        gamma = 1.0 + 0.1 * jax.random.normal(kg, (1, c), jnp.float32)
        beta = 0.1 * jax.random.normal(kb, (1, c), jnp.float32)
        mean = 0.1 * jax.random.normal(km, (1, c), jnp.float32)
        var = jnp.abs(jax.random.normal(kv, (1, c), jnp.float32)) + 0.5
        scale = gamma * jax.lax.rsqrt(var + eps)
        bias = beta - mean * scale
        return scale, bias

    s1, b1 = bn(ks[3], ks[4], ks[5], ks[6], bottleneck_ch)
    s2, b2 = bn(ks[7], ks[8], ks[9], ks[10], bottleneck_ch)
    s3, b3 = bn(ks[11], ks[12], ks[13], ks[14], out_ch)
    return (w1, w2, w3, s1, b1, s2, b2, s3, b3)


def reference(x, params):
    """Pure-JAX (XLA conv, full f32) reference for validation."""
    w1, w2, w3, s1, b1, s2, b2, s3, b3 = params
    dn = ('NHWC', 'HWIO', 'NHWC')
    h = jax.lax.conv_general_dilated(x, w1[None, None], (1, 1), 'VALID',
                                     dimension_numbers=dn)
    h = jnp.maximum(h * s1 + b1, 0.0)
    h = jax.lax.conv_general_dilated(h, w2, (1, 1), ((1, 1), (1, 1)),
                                     dimension_numbers=dn)
    h = jnp.maximum(h * s2 + b2, 0.0)
    h = jax.lax.conv_general_dilated(h, w3[None, None], (1, 1), 'VALID',
                                     dimension_numbers=dn)
    h = h * s3 + b3
    return jnp.maximum(h + x, 0.0)


if __name__ == "__main__":
    key = jax.random.PRNGKey(0)
    kx, kp = jax.random.split(key)

    N, H, W = 2, 16, 16
    bottleneck_ch = 32
    in_ch = bottleneck_ch * 4          # == out_ch (128) -> identity shortcut valid

    x = jax.random.normal(kx, (N, H, W, in_ch), jnp.float32)
    params = init_params(kp, in_ch, bottleneck_ch)

    out = jax.block_until_ready(bottleneck_block(x, params))
    ref = reference(x, params)

    assert out.shape == (N, H, W, in_ch)
    max_err = float(jnp.max(jnp.abs(out - ref)))
    # bf16 MXU inputs with f32 accumulation vs. a pure-f32 reference.
    assert jnp.allclose(out, ref, atol=5e-2, rtol=5e-2), max_err

    print("KERNEL_OK")
</pallas_src>

<mosaic_0001>
module attributes {stable_mosaic.version = 11 : i64} {
  func.func @_bottleneck_kernel(%arg0: i32, %arg1: i32, %arg2: memref<1x18x16x128xf32, #tpu.memory_space<vmem>>, %arg3: memref<128x32xbf16, #tpu.memory_space<vmem>>, %arg4: memref<288x32xbf16, #tpu.memory_space<vmem>>, %arg5: memref<32x128xbf16, #tpu.memory_space<vmem>>, %arg6: memref<1x32xf32, #tpu.memory_space<vmem>>, %arg7: memref<1x32xf32, #tpu.memory_space<vmem>>, %arg8: memref<1x128xf32, #tpu.memory_space<vmem>>, %arg9: memref<1x8x16x128xf32, #tpu.memory_space<vmem>>, %arg10: memref<10x18x32xf32, #tpu.memory_space<vmem>>) attributes {dimension_semantics = [#tpu.dimension_semantics<parallel>, #tpu.dimension_semantics<arbitrary>], iteration_bounds = array<i64: 2, 2>, scalar_prefetch = 0 : i64, scratch_operands = 1 : i64, tpu.core_type = #tpu.core_type<tc>, window_params = [{transform_indices = @transform_0, window_bounds = array<i64: 1, 18, 16, 128>}, {pipeline_mode = #tpu.pipeline_mode<synchronous>, transform_indices = @transform_1, window_bounds = array<i64: 128, 32>}, {pipeline_mode = #tpu.pipeline_mode<synchronous>, transform_indices = @transform_2, window_bounds = array<i64: 288, 32>}, {pipeline_mode = #tpu.pipeline_mode<synchronous>, transform_indices = @transform_3, window_bounds = array<i64: 32, 128>}, {pipeline_mode = #tpu.pipeline_mode<synchronous>, transform_indices = @transform_4, window_bounds = array<i64: 1, 32>}, {pipeline_mode = #tpu.pipeline_mode<synchronous>, transform_indices = @transform_5, window_bounds = array<i64: 1, 32>}, {pipeline_mode = #tpu.pipeline_mode<synchronous>, transform_indices = @transform_6, window_bounds = array<i64: 1, 128>}, {transform_indices = @transform_7, window_bounds = array<i64: 1, 8, 16, 128>}]} {
    %c8_i32 = arith.constant 8 : i32
    %0 = arith.muli %arg1, %c8_i32 : i32
    %1 = tpu.assume_multiple %0, 8 : i32
    %c0 = arith.constant 0 : index
    %2 = arith.index_cast %1 : i32 to index
    %c0_0 = arith.constant 0 : index
    %c0_1 = arith.constant 0 : index
    %3 = vector.load %arg2[%c0, %2, %c0_0, %c0_1] : memref<1x18x16x128xf32, #tpu.memory_space<vmem>>, vector<1x10x16x128xf32>
    %4 = vector.shape_cast %3 : vector<1x10x16x128xf32> to vector<10x16x128xf32>
    %5 = vector.shape_cast %4 : vector<10x16x128xf32> to vector<160x128xf32>
    %6 = arith.truncf %5 : vector<160x128xf32> to vector<160x128xbf16>
    %c0_2 = arith.constant 0 : index
    %c0_3 = arith.constant 0 : index
    %7 = vector.load %arg3[%c0_2, %c0_3] : memref<128x32xbf16, #tpu.memory_space<vmem>>, vector<128x32xbf16>
    %cst = arith.constant dense<0.000000e+00> : vector<160x32xf32>
    %8 = tpu.matmul %6, %7, %cst {dimension_numbers = #tpu.dot_dimension_numbers<[1], [0], [0], [1], [0, 0, 1, 1], [], []>} : vector<160x128xbf16>, vector<128x32xbf16>, vector<160x32xf32> -> vector<160x32xf32>
    %c0_4 = arith.constant 0 : index
    %c0_5 = arith.constant 0 : index
    %9 = vector.load %arg6[%c0_4, %c0_5] : memref<1x32xf32, #tpu.memory_space<vmem>>, vector<1x32xf32>
    %10 = vector.broadcast %9 : vector<1x32xf32> to vector<160x32xf32>
    %11 = arith.addf %8, %10 : vector<160x32xf32>
    %cst_6 = arith.constant 0.000000e+00 : f32
    %12 = vector.broadcast %cst_6 : f32 to vector<160x32xf32>
    %13 = arith.maximumf %11, %12 : vector<160x32xf32>
    %14 = vector.shape_cast %13 : vector<160x32xf32> to vector<10x16x32xf32>
    %15 = tpu.iota {dimensions = array<i32: 0>} : vector<10x1x1xi32>
    %c1_i32 = arith.constant 1 : i32
    %16 = arith.subi %1, %c1_i32 : i32
    %17 = vector.broadcast %16 : i32 to vector<10x1x1xi32>
    %18 = arith.addi %15, %17 : vector<10x1x1xi32>
    %c0_i32 = arith.constant 0 : i32
    %19 = vector.broadcast %c0_i32 : i32 to vector<10x1x1xi32>
    %20 = arith.cmpi sge, %18, %19 : vector<10x1x1xi32>
    %c16_i32 = arith.constant 16 : i32
    %21 = vector.broadcast %c16_i32 : i32 to vector<10x1x1xi32>
    %22 = arith.cmpi slt, %18, %21 : vector<10x1x1xi32>
    %23 = arith.andi %20, %22 : vector<10x1x1xi1>
    %cst_7 = arith.constant 0.000000e+00 : f32
    %24 = vector.shape_cast %23 : vector<10x1x1xi1> to vector<10x1x1xi1>
    %25 = vector.broadcast %24 : vector<10x1x1xi1> to vector<10x16x32xi1>
    %26 = vector.broadcast %cst_7 : f32 to vector<10x16x32xf32>
    %27 = arith.select %25, %14, %26 : vector<10x16x32xi1>, vector<10x16x32xf32>
    %cst_8 = arith.constant 0.000000e+00 : f32
    %28 = vector.broadcast %cst_8 : f32 to vector<10x1x32xf32>
    %c0_9 = arith.constant 0 : index
    %c0_10 = arith.constant 0 : index
    %c0_11 = arith.constant 0 : index
    %29 = vector.load %arg10[%c0_9, %c0_10, %c0_11] : memref<10x18x32xf32, #tpu.memory_space<vmem>>, vector<10x1x32xf32>
    tpu.vector_store %arg10[%c0_9, %c0_10, %c0_11], %28 {strides = array<i32>} : memref<10x18x32xf32, #tpu.memory_space<vmem>>, vector<10x1x32xf32>,
    %c0_12 = arith.constant 0 : index
    %c17 = arith.constant 17 : index
    %c0_13 = arith.constant 0 : index
    %30 = vector.load %arg10[%c0_12, %c17, %c0_13] : memref<10x18x32xf32, #tpu.memory_space<vmem>>, vector<10x1x32xf32>
    tpu.vector_store %arg10[%c0_12, %c17, %c0_13], %28 {strides = array<i32>} : memref<10x18x32xf32, #tpu.memory_space<vmem>>, vector<10x1x32xf32>,
    %c0_14 = arith.constant 0 : index
    %c1 = arith.constant 1 : index
    %c0_15 = arith.constant 0 : index
    %31 = vector.load %arg10[%c0_14, %c1, %c0_15] : memref<10x18x32xf32, #tpu.memory_space<vmem>>, vector<10x16x32xf32>
    tpu.vector_store %arg10[%c0_14, %c1, %c0_15], %27 {strides = array<i32>} : memref<10x18x32xf32, #tpu.memory_space<vmem>>, vector<10x16x32xf32>,
    %c0_16 = arith.constant 0 : index
    %c0_17 = arith.constant 0 : index
    %c0_18 = arith.constant 0 : index
    %32 = vector.load %arg10[%c0_16, %c0_17, %c0_18] : memref<10x18x32xf32, #tpu.memory_space<vmem>>, vector<8x16x32xf32>
    %33 = arith.truncf %32 : vector<8x16x32xf32> to vector<8x16x32xbf16>
    %c0_19 = arith.constant 0 : index
    %c1_20 = arith.constant 1 : index
    %c0_21 = arith.constant 0 : index
    %34 = vector.load %arg10[%c0_19, %c1_20, %c0_21] : memref<10x18x32xf32, #tpu.memory_space<vmem>>, vector<8x16x32xf32>
    %35 = arith.truncf %34 : vector<8x16x32xf32> to vector<8x16x32xbf16>
    %c0_22 = arith.constant 0 : index
    %c2 = arith.constant 2 : index
    %c0_23 = arith.constant 0 : index
    %36 = vector.load %arg10[%c0_22, %c2, %c0_23] : memref<10x18x32xf32, #tpu.memory_space<vmem>>, vector<8x16x32xf32>
    %37 = arith.truncf %36 : vector<8x16x32xf32> to vector<8x16x32xbf16>
    %c1_24 = arith.constant 1 : index
    %c0_25 = arith.constant 0 : index
    %c0_26 = arith.constant 0 : index
    %38 = vector.load %arg10[%c1_24, %c0_25, %c0_26] : memref<10x18x32xf32, #tpu.memory_space<vmem>>, vector<8x16x32xf32>
    %39 = arith.truncf %38 : vector<8x16x32xf32> to vector<8x16x32xbf16>
    %c1_27 = arith.constant 1 : index
    %c1_28 = arith.constant 1 : index
    %c0_29 = arith.constant 0 : index
    %40 = vector.load %arg10[%c1_27, %c1_28, %c0_29] : memref<10x18x32xf32, #tpu.memory_space<vmem>>, vector<8x16x32xf32>
    %41 = arith.truncf %40 : vector<8x16x32xf32> to vector<8x16x32xbf16>
    %c1_30 = arith.constant 1 : index
    %c2_31 = arith.constant 2 : index
    %c0_32 = arith.constant 0 : index
    %42 = vector.load %arg10[%c1_30, %c2_31, %c0_32] : memref<10x18x32xf32, #tpu.memory_space<vmem>>, vector<8x16x32xf32>
    %43 = arith.truncf %42 : vector<8x16x32xf32> to vector<8x16x32xbf16>
    %c2_33 = arith.constant 2 : index
    %c0_34 = arith.constant 0 : index
    %c0_35 = arith.constant 0 : index
    %44 = vector.load %arg10[%c2_33, %c0_34, %c0_35] : memref<10x18x32xf32, #tpu.memory_space<vmem>>, vector<8x16x32xf32>
    %45 = arith.truncf %44 : vector<8x16x32xf32> to vector<8x16x32xbf16>
    %c2_36 = arith.constant 2 : index
    %c1_37 = arith.constant 1 : index
    %c0_38 = arith.constant 0 : index
    %46 = vector.load %arg10[%c2_36, %c1_37, %c0_38] : memref<10x18x32xf32, #tpu.memory_space<vmem>>, vector<8x16x32xf32>
    %47 = arith.truncf %46 : vector<8x16x32xf32> to vector<8x16x32xbf16>
    %c2_39 = arith.constant 2 : index
    %c2_40 = arith.constant 2 : index
    %c0_41 = arith.constant 0 : index
    %48 = vector.load %arg10[%c2_39, %c2_40, %c0_41] : memref<10x18x32xf32, #tpu.memory_space<vmem>>, vector<8x16x32xf32>
    %49 = arith.truncf %48 : vector<8x16x32xf32> to vector<8x16x32xbf16>
    %50 = tpu.concatenate %33, %35, %37, %39, %41, %43, %45, %47, %49 in 2 : vector<8x16x32xbf16>, vector<8x16x32xbf16>, vector<8x16x32xbf16>, vector<8x16x32xbf16>, vector<8x16x32xbf16>, vector<8x16x32xbf16>, vector<8x16x32xbf16>, vector<8x16x32xbf16>, vector<8x16x32xbf16> -> vector<8x16x288xbf16>
    %51 = vector.shape_cast %50 : vector<8x16x288xbf16> to vector<128x288xbf16>
    %c0_42 = arith.constant 0 : index
    %c0_43 = arith.constant 0 : index
    %52 = vector.load %arg4[%c0_42, %c0_43] : memref<288x32xbf16, #tpu.memory_space<vmem>>, vector<288x32xbf16>
    %cst_44 = arith.constant dense<0.000000e+00> : vector<128x32xf32>
    %53 = tpu.matmul %51, %52, %cst_44 {dimension_numbers = #tpu.dot_dimension_numbers<[1], [0], [0], [1], [0, 0, 1, 1], [], []>} : vector<128x288xbf16>, vector<288x32xbf16>, vector<128x32xf32> -> vector<128x32xf32>
    %c0_45 = arith.constant 0 : index
    %c0_46 = arith.constant 0 : index
    %54 = vector.load %arg7[%c0_45, %c0_46] : memref<1x32xf32, #tpu.memory_space<vmem>>, vector<1x32xf32>
    %55 = vector.broadcast %54 : vector<1x32xf32> to vector<128x32xf32>
    %56 = arith.addf %53, %55 : vector<128x32xf32>
    %cst_47 = arith.constant 0.000000e+00 : f32
    %57 = vector.broadcast %cst_47 : f32 to vector<128x32xf32>
    %58 = arith.maximumf %56, %57 : vector<128x32xf32>
    %59 = arith.truncf %58 : vector<128x32xf32> to vector<128x32xbf16>
    %c0_48 = arith.constant 0 : index
    %c0_49 = arith.constant 0 : index
    %60 = vector.load %arg5[%c0_48, %c0_49] : memref<32x128xbf16, #tpu.memory_space<vmem>>, vector<32x128xbf16>
    %cst_50 = arith.constant dense<0.000000e+00> : vector<128x128xf32>
    %61 = tpu.matmul %59, %60, %cst_50 {dimension_numbers = #tpu.dot_dimension_numbers<[1], [0], [0], [1], [0, 0, 1, 1], [], []>} : vector<128x32xbf16>, vector<32x128xbf16>, vector<128x128xf32> -> vector<128x128xf32>
    %62 = vector.extract_strided_slice %4 {offsets = [1, 0, 0], sizes = [8, 16, 128], strides = [1, 1, 1]} : vector<10x16x128xf32> to vector<8x16x128xf32>
    %63 = vector.shape_cast %62 : vector<8x16x128xf32> to vector<128x128xf32>
    %c0_51 = arith.constant 0 : index
    %c0_52 = arith.constant 0 : index
    %64 = vector.load %arg8[%c0_51, %c0_52] : memref<1x128xf32, #tpu.memory_space<vmem>>, vector<1x128xf32>
    %65 = vector.broadcast %64 : vector<1x128xf32> to vector<128x128xf32>
    %66 = arith.addf %61, %65 : vector<128x128xf32>
    %67 = arith.addf %66, %63 : vector<128x128xf32>
    %cst_53 = arith.constant 0.000000e+00 : f32
    %68 = vector.broadcast %cst_53 : f32 to vector<128x128xf32>
    %69 = arith.maximumf %67, %68 : vector<128x128xf32>
    %70 = vector.shape_cast %69 : vector<128x128xf32> to vector<8x16x128xf32>
    %c0_54 = arith.constant 0 : index
    %c0_55 = arith.constant 0 : index
    %c0_56 = arith.constant 0 : index
    %c0_57 = arith.constant 0 : index
    %71 = vector.load %arg9[%c0_54, %c0_55, %c0_56, %c0_57] : memref<1x8x16x128xf32, #tpu.memory_space<vmem>>, vector<1x8x16x128xf32>
    %72 = vector.shape_cast %71 : vector<1x8x16x128xf32> to vector<8x16x128xf32>
    %73 = vector.shape_cast %70 : vector<8x16x128xf32> to vector<1x8x16x128xf32>
    tpu.vector_store %arg9[%c0_54, %c0_55, %c0_56, %c0_57], %73 {strides = array<i32>} : memref<1x8x16x128xf32, #tpu.memory_space<vmem>>, vector<1x8x16x128xf32>,
    return
  }
  func.func @transform_0(%arg0: i32, %arg1: i32) -> (i32, i32, i32, i32) {
    %c0_i32 = arith.constant 0 : i32
    %c0_i32_0 = arith.constant 0 : i32
    %c0_i32_1 = arith.constant 0 : i32
    %c0_i32_2 = arith.constant 0 : i32
    return %arg0, %c0_i32, %c0_i32_0, %c0_i32_1 : i32, i32, i32, i32
  }
  func.func @transform_1(%arg0: i32, %arg1: i32) -> (i32, i32) {
    %c0_i32 = arith.constant 0 : i32
    %c0_i32_0 = arith.constant 0 : i32
    %c0_i32_1 = arith.constant 0 : i32
    return %c0_i32, %c0_i32_0 : i32, i32
  }
  func.func @transform_2(%arg0: i32, %arg1: i32) -> (i32, i32) {
    %c0_i32 = arith.constant 0 : i32
    %c0_i32_0 = arith.constant 0 : i32
    %c0_i32_1 = arith.constant 0 : i32
    return %c0_i32, %c0_i32_0 : i32, i32
  }
  func.func @transform_3(%arg0: i32, %arg1: i32) -> (i32, i32) {
    %c0_i32 = arith.constant 0 : i32
    %c0_i32_0 = arith.constant 0 : i32
    %c0_i32_1 = arith.constant 0 : i32
    return %c0_i32, %c0_i32_0 : i32, i32
  }
  func.func @transform_4(%arg0: i32, %arg1: i32) -> (i32, i32) {
    %c0_i32 = arith.constant 0 : i32
    %c0_i32_0 = arith.constant 0 : i32
    %c0_i32_1 = arith.constant 0 : i32
    return %c0_i32, %c0_i32_0 : i32, i32
  }
  func.func @transform_5(%arg0: i32, %arg1: i32) -> (i32, i32) {
    %c0_i32 = arith.constant 0 : i32
    %c0_i32_0 = arith.constant 0 : i32
    %c0_i32_1 = arith.constant 0 : i32
    return %c0_i32, %c0_i32_0 : i32, i32
  }
  func.func @transform_6(%arg0: i32, %arg1: i32) -> (i32, i32) {
    %c0_i32 = arith.constant 0 : i32
    %c0_i32_0 = arith.constant 0 : i32
    %c0_i32_1 = arith.constant 0 : i32
    return %c0_i32, %c0_i32_0 : i32, i32
  }
  func.func @transform_7(%arg0: i32, %arg1: i32) -> (i32, i32, i32, i32) {
    %c0_i32 = arith.constant 0 : i32
    %c0_i32_0 = arith.constant 0 : i32
    %c0_i32_1 = arith.constant 0 : i32
    return %arg0, %arg1, %c0_i32, %c0_i32_0 : i32, i32, i32, i32
  }
}

</mosaic_0001>

<bundles_post_ra>
// kernel: tpu_custom_call.1
= control target key start
LH: loop header
LB: loop body
LE: loop exit
PB: predicated region body
PF: predicated region fallthrough
CT: control target
= control target key end

     0   :  { %12 = vsyncpa [#allocation4], 0  ;;  %s3321_s0 = inlined_call_operand.hbm [shape: f32[2,18,16,128], index: 0, kind: input, shape index: {}]   ;;  %s3322_s1 = inlined_call_operand.vmem [shape: bf16[128,32], index: 1, kind: input, shape index: {}]   ;;  %s3323_s2 = inlined_call_operand.vmem [shape: bf16[288,32], index: 2, kind: input, shape index: {}]   ;;  %s3324_s3 = inlined_call_operand.vmem [shape: bf16[32,128], index: 3, kind: input, shape index: {}]   ;;  %s3325_s4 = inlined_call_operand.vmem [shape: f32[1,32], index: 4, kind: input, shape index: {}]   ;;  %s3326_s5 = inlined_call_operand.vmem [shape: f32[1,32], index: 5, kind: input, shape index: {}]   ;;  %s3327_s6 = inlined_call_operand.vmem [shape: f32[1,128], index: 6, kind: input, shape index: {}]   ;;  %s3328_s7 = inlined_call_operand.hbm [shape: f32[2,16,16,128], index: 7, kind: output, shape index: {}]  }
   0x1   :  { %14 = vsyncpa [#allocation4 + $0x1], 0 }
   0x2   :  { %15 = vsyncpa [#allocation5], 0 }
   0x3   :  { %17 = vsyncpa [#allocation5 + $0x1], 0  ;;  %s2599_s24 = smov 0   ;;  %s2601_s25 = smov 0  }
   0x4   :  { %s2603_s26 = smov 0   ;;  %s2605_s27 = smov 0  }
   0x5   :  { %s2607_s28 = smov 0   ;;  %s2609_s29 = smov 0  }
   0x6   :  { %s2611_s30 = smov 0   ;;  %s2613_s8 = smov 0  }
   0x7   :  { %s2615_s9 = smov 0   ;;  %s2617_s10 = smov 0  }
   0x8   :  { %s2619_s11 = smov 0  }
   0x9 LB: > { %3336 = sst [smem:[#allocation9_spill]] %s2509_s24  ;;  %s2086_s12 = sadd.s32 4294967295, %s2549_s11   ;;  %s2549_s11 = sphi %s2619_s11, %s23_s11   ;;  %s2545_s10 = sphi %s2617_s10, %s3380_s10   ;;  %s2541_s9 = sphi %s2615_s9, %s3374_s9   ;;  %s2537_s8 = sphi %s2613_s8, %s3373_s8   ;;  %s2533_s30 = sphi %s2611_s30, %s3372_s30   ;;  %s2529_s29 = sphi %s2609_s29, %s3371_s29   ;;  %s2525_s28 = sphi %s2607_s28, %s3379_s28   ;;  %s2521_s27 = sphi %s2605_s27, %s3378_s27   ;;  %s2517_s26 = sphi %s2603_s26, %s3369_s26   ;;  %s2513_s25 = sphi %s2601_s25, %s3377_s25   ;;  %s2509_s24 = sphi %s2599_s24, %s3376_s24  }
   0xa   : > { %3337 = sst [smem:[#allocation10_spill]] %s2517_s26  ;;  %s2087_s13 = sadd.s32 4294967294, %s2549_s11  }
   0xb   : > { %3338 = sst [smem:[#allocation11_spill]] %s2529_s29  ;;  %s32_s14 = sadd.s32 1, %s2541_s9 }
   0xc   : > { %3339 = sst [smem:[#allocation12_spill]] %s2541_s9  ;;  %s35_s15 = sadd.s32 1, %s2545_s10 }
   0xd   : > { %3340 = sst [smem:[#allocation13_spill]] %s2545_s10  ;;  %p33_p0 = scmp.ge.s32.totalorder %s32_s14, 2 }
   0xe   : > { %s42_s16 = sadd.s32 1, %s2529_s29  ;;  %p49_p1 = scmp.ne.s32.totalorder %s2529_s29, %s2525_s28 }
   0xf   : > { %p50_p2 = scmp.eq.s32.totalorder %s2549_s11, 0  ;;  %s3382_s14 = smov (%p33_p0, %s32_s14), 0 }
  0x10   : > { %3341 = sst [smem:[#allocation14_spill]] %s3382_s14  ;;  %s3384_s15 = smov (!%p33_p0, %s35_s15), %s2545_s10 }
  0x11   : > { %p2663_p3 = por %p50_p2, %p49_p1  ;;  %p55_p4 = scmp.ne.s32.totalorder %s2525_s28, %s2521_s27 }
  0x12   : > { %p37_p5 = scmp.ge.s32.totalorder %s3384_s15, 2  ;;  %p56_p6 = scmp.eq.s32.totalorder %s2086_s12, 0 }
  0x13   : > { %s192_s18 = ssub.s32 %s2541_s9, %s3382_s14  ;;  %s196_s19 = sadd.s32 1, %s2517_s26 }
  0x14   : > { %s3386_s15 = smov (%p37_p5, %s3384_s15), 0  ;;  %p2673_p7 = por %p56_p6, %p55_p4 }
  0x15   : > { %3343 = sst [smem:[#allocation15_spill]] %s3386_s15  ;;  %p206_p8 = scmp.ne.s32.totalorder %s2517_s26, %s2513_s25 }
  0x16   : > { %s39_s21 = ssub.s32 %s2545_s10, %s3386_s15  ;;  %p207_p9 = scmp.eq.s32.totalorder %s2086_s12, 3 }
  0x17   : > { %p40_p10 = scmp.eq.s32.totalorder %s39_s21, 0  ;;  %s193_s22 = sor.u32 %s192_s18, %s39_s21 }
  0x18   : > { %p194_p11 = scmp.eq.s32.totalorder %s193_s22, 0  ;;  %p2681_p12 = por %p207_p9, %p206_p8 }
  0x19   : > { %s2686_s27 = scalar_select %p40_p10, %s2529_s29, %s42_s16  }
  0x1a   : > { %s2689_s14 = scalar_select %p194_p11, %s2517_s26, %s196_s19  }
  0x1b   : > { %3346 = sst [smem:[#allocation16_spill]] %s2686_s27  ;;  %p212_p13 = scmp.ne.s32.totalorder %s2513_s25, %s2509_s24 }
  0x1c   : > { %3347 = sst [smem:[#allocation17_spill]] %s2689_s14  ;;  %p213_p0 = scmp.eq.s32.totalorder %s2087_s13, 3 }
  0x1d   : > { %p2280_p1 = scmp.lt.s32.totalorder %s2549_s11, 4  ;;  %s251_s12 = sand.u32 1, %s2529_s29  }
  0x1e   : > { %p2694_p2 = por %p213_p0, %p212_p13  ;;  %s2265_s18 = smul.u32 288, %s251_s12 }
  0x1f   : > { %s2266_s21 = smul.u32 288, %s2545_s10  ;;  %p2273_p4 = pnand %p2280_p1, %p2663_p3 }
  0x20   : > { %s255_s27 = scalar_lea.vmem [#allocation3], %s2265_s18  ;;  %p2091_p5 = scmp.ge.s32.totalorder %s2549_s11, 1 }
  0x21   : > { %s260_s16 = scalar_lea.hbm %s3321_s0, %s2266_s21  ;;  %s263_s19 = sshll.u32 %s255_s27, 4  ;;  %s264_s19 = int_to_ptr.vmem [resolvable:$true] %s263_s19 }
  0x22   : > { %s261_s14 = sshll.u32 %s260_s16, 4  ;;  %s252_s13 = scalar_lea.sflag [#allocation4], %s251_s12  ;;  %s262_s14 = int_to_ptr.hbm [resolvable:$true] %s261_s14 }
  0x23   : > { %s2551_s26 = smov 128   ;;  %s2552_s24 = smov 8  }
  0x24   : > { %2275 = dma.hbm_to_vmem [thread:$0]  (!%p2273_p4), %s262_s14, 4608, %s264_s19, %s252_s13, %s2551_s26, %s2551_s26, %s2552_s24  }
  0x25   : > { %p271_p6 = scmp.lt.s32.totalorder %s2549_s11, 5 }
  0x27   : > { %p272_p8 = pnand %p2091_p5, %p271_p6 }
  0x28   : > { %s277_s17 = sand.u32 (!%p272_p8), 1, %s2525_s28  }
  0x29   : > { %275 = sbr.rel (%p272_p8) target bundleno = 904 (0x388), region = 48  ;;  %s278_s29 = scalar_lea.sflag (!%p272_p8), [#allocation4], %s277_s17 }
  0x2a   : > { %s2267_s10 = smul.u32 (!%p272_p8), 288, %s277_s17 }
  0x2c   : > { %s281_s15 = scalar_lea.vmem (!%p272_p8), [#allocation3], %s2267_s10 }
  0x2e   : > { %2500 = dma.done.wait (%p2673_p7), %s278_s29, 4608  }
  0x2f   : > { %2502 = vsyncadd (%p2673_p7), %s278_s29, 4294962688  ;;  %v2239_v0 = vld [vmem:[%s3322_s1 + $0x38] sm:$0xff]  ;;  %v2238_v1 = vld [vmem:[%s3322_s1 + $0x30] sm:$0xff]  ;;  %s2231_s19 = sshll.u32 %s2533_s30, 7  ;;  %vm576_vm0 = vcmask 253952   ;;  %v2553_v29 = vmov 0.0  }
  0x30   : > { %416 = vmatpush.bf16.msra.mxu0 %v2239_v0  ;;  %v2237_v2 = vld [vmem:[%s3322_s1 + $0x28] sm:$0xff]  ;;  %v2236_v3 = vld [vmem:[%s3322_s1 + $0x20] sm:$0xff]  ;;  %v2235_v4 = vld [vmem:[%s3322_s1 + $0x18] sm:$0xff]  ;;  %s2734_s27 = scalar_lea.vmem %s281_s15, %s2231_s19 [#allocation3]  ;;  %587 = vst.msk [vmem:[#allocation2 + $0x11] sm:$0x1] %vm576_vm0, %v2553_v29  ;;  %s2093_s15 = sshll.u32 %s2533_s30, 3 }
  0x31   : > { %v2234_v5 = vld [vmem:[%s3322_s1 + $0x10] sm:$0xff]  ;;  %v2233_v6 = vld [vmem:[%s3322_s1 + $0x8] sm:$0xff]  ;;  %v2232_v7 = vld [vmem:[%s3322_s1] sm:$0xff]  ;;  %577 = vst.msk [vmem:[#allocation2] sm:$0x1] %vm576_vm0, %v2553_v29  ;;  %s2127_s26 = sadd.s32 4294967295, %s2093_s15 }
  0x32   : > { %v318_v8 = vld [vmem:[%s2734_s27] sm:$0xff]  ;;  %v319_v9 = vld [vmem:[%s2734_s27 + $0x8] sm:$0xff]  ;;  %v320_v11 = vld [vmem:[%s2734_s27 + $0x10] sm:$0xff]  ;;  %578 = vst.msk [vmem:[#allocation2 + $0x18] sm:$0x1] %vm576_vm0, %v2553_v29  ;;  %v2776_v33 = vstv %s2127_s26  ;;  %vm597_vm4 = vcmask 261120  }
  0x33   : > { %v338_v10 = vpack.c.bf16 %v319_v9, %v318_v8  ;;  %v321_v12 = vld [vmem:[%s2734_s27 + $0x18] sm:$0xff]  ;;  %v322_v14 = vld [vmem:[%s2734_s27 + $0x20] sm:$0xff]  ;;  %v323_v15 = vld [vmem:[%s2734_s27 + $0x28] sm:$0xff]  ;;  %579 = vst.msk [vmem:[#allocation2 + $0x30] sm:$0x1] %vm576_vm0, %v2553_v29  ;;  %vm506_vm1 = vcmp.ge.s32.totalorder %v2776_v33, 0 }
  0x34   : > { %417 = vmatpush.bf16.msra.mxu0 %v2238_v1  ;;  %v339_v13 = vpack.c.bf16 %v321_v12, %v320_v11  ;;  %v340_v16 = vpack.c.bf16 %v323_v15, %v322_v14  ;;  %v324_v17 = vld [vmem:[%s2734_s27 + $0x30] sm:$0xff]  ;;  %v325_v18 = vld [vmem:[%s2734_s27 + $0x38] sm:$0xff]  ;;  %v326_v20 = vld [vmem:[%s2734_s27 + $0x40] sm:$0xff]  ;;  %580 = vst.msk [vmem:[#allocation2 + $0x48] sm:$0x1] %vm576_vm0, %v2553_v29  ;;  %vm516_vm2 = vcmp.lt.s32.totalorder %v2776_v33, 16 }
  0x35   : > { %v341_v19 = vpack.c.bf16 %v325_v18, %v324_v17  ;;  %v327_v21 = vld [vmem:[%s2734_s27 + $0x48] sm:$0xff]  ;;  %v328_v23 = vld [vmem:[%s2734_s27 + $0x50] sm:$0xff]  ;;  %v329_v24 = vld [vmem:[%s2734_s27 + $0x58] sm:$0xff]  ;;  %581 = vst.msk [vmem:[#allocation2 + $0x60] sm:$0x1] %vm576_vm0, %v2553_v29  ;;  %v497_v45 = vadd.s32 1, %v2776_v33 }
  0x36   : > { %v342_v22 = vpack.c.bf16 %v327_v21, %v326_v20  ;;  %v343_v25 = vpack.c.bf16 %v329_v24, %v328_v23  ;;  %v330_v26 = vld [vmem:[%s2734_s27 + $0x60] sm:$0xff]  ;;  %v331_v27 = vld [vmem:[%s2734_s27 + $0x68] sm:$0xff]  ;;  %v332_v30 = vld [vmem:[%s2734_s27 + $0x70] sm:$0xff]  ;;  %582 = vst.msk [vmem:[#allocation2 + $0x78] sm:$0x1] %vm576_vm0, %v2553_v29  ;;  %s2554_s10 = smov 32  }
  0x37   : > { %v344_v28 = vpack.c.bf16 %v331_v27, %v330_v26  ;;  %v333_v31 = vld [vmem:[%s2734_s27 + $0x78] sm:$0xff]  ;;  %583 = vst.msk [vmem:[#allocation2 + $0x90] sm:$0x1] %vm576_vm0, %v2553_v29  ;;  %v334_v34 = vld [vmem:[%s2734_s27 + $0x80] sm:$0xff]  ;;  %v335_v35 = vld [vmem:[%s2734_s27 + $0x88] sm:$0xff]  ;;  %vm507_vm5 = vcmp.ge.s32.totalorder %v497_v45, 0 }
  0x38   : > { %418 = vmatpush.bf16.msra.mxu0 %v2237_v2  ;;  %584 = vst.msk [vmem:[#allocation2 + $0xa8] sm:$0x1] %vm576_vm0, %v2553_v29  ;;  %v345_v32 = vpack.c.bf16 %v333_v31, %v332_v30  ;;  %v2783_v36 = vld [vmem:[%s3325_s4] ss:$0 sm:$0xff]  ;;  %v346_v37 = vpack.c.bf16 %v335_v35, %v334_v34  ;;  %vm526_vm3 = vmand %vm506_vm1, %vm516_vm2  ;;  %v336_v46 = vld [vmem:[%s2734_s27 + $0x90] sm:$0xff]  ;;  %vm517_vm6 = vcmp.lt.s32.totalorder %v497_v45, 16 }
  0x39   : > { %585 = vst.msk [vmem:[#allocation2 + $0xc0] sm:$0x1] %vm576_vm0, %v2553_v29  ;;  %v337_v47 = vld [vmem:[%s2734_s27 + $0x98] sm:$0xff]  ;;  %vm2795_vm7 = vmand %vm507_vm5, %vm517_vm6  ;;  %s2555_s21 = smov 64   ;;  %s2556_s29 = smov 96   ;;  %v2244_v45 = vld [vmem:[%s3323_s2 + $0x20] sm:$0xff] }
  0x3a   : > { %586 = vst.msk [vmem:[#allocation2 + $0xd8] sm:$0x1] %vm576_vm0, %v2553_v29  ;;  %v347_v49 = vpack.c.bf16 %v337_v47, %v336_v46  ;;  %s310_s17 = sand.u32 1, %s2513_s25   ;;  %s2260_s15 = sshll.u32 %s2533_s30, 4 }
  0x3b   : > { %588 = vst.msk [vmem:[#allocation2 + $0x29] sm:$0x1] %vm576_vm0, %v2553_v29  ;;  %s2092_s18 = sshll.u32 %s310_s17, 7  ;;  %s2227_s26 = sshll.u32 %s2537_s8, 5 }
  0x3c   : > { %419 = vmatpush.bf16.msra.mxu0 %v2236_v3  ;;  %589 = vst.msk [vmem:[#allocation2 + $0x41] sm:$0x1] %vm576_vm0, %v2553_v29  ;;  %s3218_s24 = scalar_lea.vmem [#allocation6], %s2092_s18  ;;  %s1991_s14 = sadd.s32 %s2260_s15, %s2227_s26 }
  0x3d   : > { %590 = vst.msk [vmem:[#allocation2 + $0x59] sm:$0x1] %vm576_vm0, %v2553_v29  ;;  %s2228_s12 = sshll.u32 %s1991_s14, 3  ;;  %s1994_s30 = sshll.u32 %s3218_s24, 4  ;;  %s1995_s30 = int_to_ptr.vmem [resolvable:$true] %s1994_s30 }
  0x3e   : > { %591 = vst.msk [vmem:[#allocation2 + $0x71] sm:$0x1] %vm576_vm0, %v2553_v29  ;;  %s1979_s20 = scalar_lea.sflag [#allocation5], %s310_s17  ;;  %s2447_s18 = scalar_lea.hbm %s3328_s7, 512 }
  0x3f   : > { %592 = vst.msk [vmem:[#allocation2 + $0x89] sm:$0x1] %vm576_vm0, %v2553_v29 }
  0x40   : > { %420 = vmatpush.bf16.msra.mxu0 %v2235_v4  ;;  %593 = vst.msk [vmem:[#allocation2 + $0xa1] sm:$0x1] %vm576_vm0, %v2553_v29 }
  0x41   : > { %594 = vst.msk [vmem:[#allocation2 + $0xb9] sm:$0x1] %vm576_vm0, %v2553_v29 }
  0x42   : > { %595 = vst.msk [vmem:[#allocation2 + $0xd1] sm:$0x1] %vm576_vm0, %v2553_v29 }
  0x43   : > { %596 = vst.msk [vmem:[#allocation2 + $0xe9] sm:$0x1] %vm576_vm0, %v2553_v29 }
  0x44   : > { %421 = vmatpush.bf16.msra.mxu0 %v2234_v5  ;;  %v498_v5 = vadd.s32 2, %v2776_v33 }
  0x46   : > { %vm508_vm8 = vcmp.ge.s32.totalorder %v498_v5, 0  ;;  %vm518_vm9 = vcmp.lt.s32.totalorder %v498_v5, 16 }
  0x47   : > { %vm2809_vm10 = vmand %vm508_vm8, %vm518_vm9 }
  0x48   : > { %422 = vmatpush.bf16.msra.mxu0 %v2233_v6 }
  0x4c   : > { %423 = vmatpush.bf16.msra.mxu0 %v2232_v7 }
  0x4f   : > { %424 = vmatmul.bf16.vlgmr.msra.gmra.mxu0 %v338_v10 }
  0x5f   : > { %429 = vmatmul.bf16.gmra.mxu0 %v339_v13 }
  0x6f   : > { %434 = vmatmul.bf16.gmra.mxu0 %v340_v16 }
  0x7f   : > { %439 = vmatmul.bf16.gmra.mxu0 %v341_v19 }
  0x8f   : > { %444 = vmatmul.bf16.gmra.mxu0 %v342_v22 }
  0x9f   : > { %449 = vmatmul.bf16.gmra.mxu0 %v343_v25 }
  0xaf   : > { %454 = vmatmul.bf16.gmra.mxu0 %v344_v28 }
  0xbf   : > { %459 = vmatmul.bf16.gmra.mxu0 %v345_v32 }
  0xcc   : > { %v425_v38 = vpop.f32.mrf.mxu0 }
  0xcd   : > { %v426_v39 = vadd.f32 %v2783_v36, %v425_v38  ;;  %v499_v38 = vadd.s32 3, %v2776_v33 }
  0xcf   : > { %v475_v40 = vmax.f32 %v426_v39, 0.0  ;;  %464 = vmatmul.bf16.gmra.mxu0 %v346_v37  ;;  %vm509_vm11 = vcmp.ge.s32.totalorder %v499_v38, 0  ;;  %vm519_vm12 = vcmp.lt.s32.totalorder %v499_v38, 16 }
  0xd0   : > { %vm2825_vm13 = vmand %vm509_vm11, %vm519_vm12 }
  0xd1   : > { %v556_v41 = vsel %vm526_vm3, %v475_v40, 0.0 }
  0xd2   : > { %598 = vst.msk [vmem:[#allocation2 + $0x1] sm:$0xff] %vm597_vm4, %v556_v41 }
  0xd4   : > { %v427_v42 = vpop.f32.mrf.mxu0 }
  0xd5   : > { %v428_v43 = vadd.f32 %v2783_v36, %v427_v42 }
  0xd7   : > { %v476_v44 = vmax.f32 %v428_v43, 0.0 }
  0xd9   : > { %v557_v48 = vsel %vm526_vm3, %v476_v44, 0.0  ;;  %v650_v52 = vld [vmem:[#allocation2 + $0x1] sm:$0xff] }
  0xda   : > { %599 = vst.msk [vmem:[#allocation2 + $0x9] sm:$0xff] %vm597_vm4, %v557_v48  ;;  %v666_v55 = vpack.c.bf16 %v650_v52, %v650_v52 }
  0xdc   : > { %v430_v50 = vpop.f32.mrf.mxu0  ;;  %v964_v62 = vunpack.c.l.b16 %v666_v55 }
  0xdd   : > { %v431_v51 = vadd.f32 %v2783_v36, %v430_v50 }
  0xdf   : > { %v477_v54 = vmax.f32 %v431_v51, 0.0  ;;  %469 = vmatmul.bf16.gmra.mxu0 %v347_v49 }
  0xe1   : > { %v558_v56 = vsel %vm2795_vm7, %v477_v54, 0.0  ;;  %v651_v57 = vld [vmem:[#allocation2 + $0x9] sm:$0xff] }
  0xe2   : > { %600 = vst.msk [vmem:[#allocation2 + $0x19] sm:$0xff] %vm597_vm4, %v558_v56  ;;  %v667_v58 = vpack.c.bf16 %v651_v57, %v651_v57  ;;  %v682_v59 = vld [vmem:[#allocation2 + $0x2] sm:$0xff]  ;;  %v683_v60 = vld [vmem:[#allocation2 + $0xa] sm:$0xff] }
  0xe3   : > { %v698_v2 = vpack.c.bf16 %v682_v59, %v682_v59  ;;  %v699_v3 = vpack.c.bf16 %v683_v60, %v683_v60 }
  0xe4   : > { %v432_v61 = vpop.f32.mrf.mxu0  ;;  %v965_v63 = vunpack.c.l.b16 %v667_v58 }
  0xe5   : > { %v433_v0 = vadd.f32 %v2783_v36, %v432_v61  ;;  %v1020_v7 = vunpack.c.l.b16 %v698_v2  ;;  %v1021_v8 = vunpack.c.l.b16 %v699_v3 }
  0xe6   : > { %v980_v1 = vpack.c.b16 %v965_v63, %v964_v62 }
  0xe7   : > { %v478_v4 = vmax.f32 %v433_v0, 0.0  ;;  %v1036_v14 = vpack.c.b16 %v1021_v8, %v1020_v7 }
  0xe8   : > { %988 = vrot.lane.b32.xlu0 %v980_v1, %s2554_s10 }
  0xe9   : > { %v559_v6 = vsel %vm2795_vm7, %v478_v4, 0.0  ;;  %v715_v11 = vld [vmem:[#allocation2 + $0x18] sm:$0xff]  ;;  %v500_v4 = vadd.s32 4, %v2776_v33 }
  0xea   : > { %601 = vst.msk [vmem:[#allocation2 + $0x21] sm:$0xff] %vm597_vm4, %v559_v6  ;;  %v652_v12 = vld [vmem:[#allocation2 + $0x19] sm:$0xff]  ;;  %v731_v16 = vpack.c.bf16 %v715_v11, %v715_v11 }
  0xeb   : > { %v668_v17 = vpack.c.bf16 %v652_v12, %v652_v12  ;;  %vm510_vm14 = vcmp.ge.s32.totalorder %v500_v4, 0  ;;  %vm520_vm15 = vcmp.lt.s32.totalorder %v500_v4, 16  ;;  %v2247_v12 = vld [vmem:[%s3323_s2 + $0x38] sm:$0xff] }
  0xec   : > { %v435_v9 = vpop.f32.mrf.mxu0  ;;  %v1076_v26 = vunpack.c.l.b16 %v731_v16  ;;  %vm2842_vm0 = vmand %vm510_vm14, %vm520_vm15  ;;  %1666 = vmatpush.bf16.msra.mxu1 %v2247_v12  ;;  %v2241_v12 = vld [vmem:[%s3323_s2 + $0x8] sm:$0xff] }
  0xed   : > { %v436_v10 = vadd.f32 %v2783_v36, %v435_v9  ;;  %v966_v28 = vunpack.c.l.b16 %v668_v17 }
  0xef   : > { %v479_v15 = vmax.f32 %v436_v10, 0.0 }
  0xf0   : > { %1044 = vrot.lane.b32.xlu0 %v1036_v14, %s2555_s21 }
  0xf1   : > { %v560_v18 = vsel %vm2809_vm10, %v479_v15, 0.0  ;;  %v716_v19 = vld [vmem:[#allocation2 + $0x20] sm:$0xff] }
  0xf2   : > { %v653_v20 = vld [vmem:[#allocation2 + $0x21] sm:$0xff]  ;;  %602 = vst.msk [vmem:[#allocation2 + $0x31] sm:$0xff] %vm597_vm4, %v560_v18  ;;  %v732_v21 = vpack.c.bf16 %v716_v19, %v716_v19 }
  0xf3   : > { %v669_v22 = vpack.c.bf16 %v653_v20, %v653_v20  ;;  %v779_v23 = vld [vmem:[#allocation2 + $0x1a] sm:$0xff]  ;;  %v780_v24 = vld [vmem:[#allocation2 + $0x22] sm:$0xff] }
  0xf4   : > { %v437_v25 = vpop.f32.mrf.mxu0  ;;  %v1077_v27 = vunpack.c.l.b16 %v732_v21  ;;  %v795_v34 = vpack.c.bf16 %v779_v23, %v779_v23  ;;  %v796_v35 = vpack.c.bf16 %v780_v24, %v780_v24 }
  0xf5   : > { %v967_v29 = vunpack.c.l.b16 %v669_v22  ;;  %v438_v30 = vadd.f32 %v2783_v36, %v437_v25 }
  0xf6   : > { %v1092_v31 = vpack.c.b16 %v1077_v27, %v1076_v26  ;;  %v1172_v40 = vunpack.c.l.b16 %v795_v34  ;;  %v1173_v41 = vunpack.c.l.b16 %v796_v35 }
  0xf7   : > { %v981_v32 = vpack.c.b16 %v967_v29, %v966_v28  ;;  %v480_v37 = vmax.f32 %v438_v30, 0.0 }
  0xf8   : > { %1100 = vrot.lane.b32.xlu1 %v1092_v31, %s2556_s29  ;;  %v1188_v46 = vpack.c.b16 %v1173_v41, %v1172_v40 }
  0xf9   : > { %990 = vrot.lane.b32.xlu0 %v981_v32, %s2554_s10  ;;  %v561_v39 = vsel %vm2809_vm10, %v480_v37, 0.0  ;;  %v812_v44 = vld [vmem:[#allocation2 + $0x30] sm:$0xff]  ;;  %v501_v37 = vadd.s32 5, %v2776_v33 }
  0xfa   : > { %603 = vst.msk [vmem:[#allocation2 + $0x39] sm:$0xff] %vm597_vm4, %v561_v39  ;;  %v828_v48 = vpack.c.bf16 %v812_v44, %v812_v44  ;;  %v844_v63 = vld [vmem:[#allocation2 + $0x31] sm:$0xff] }
  0xfb   : > { %v860_v5 = vpack.c.bf16 %v844_v63, %v844_v63  ;;  %vm511_vm1 = vcmp.ge.s32.totalorder %v501_v37, 0  ;;  %vm521_vm2 = vcmp.lt.s32.totalorder %v501_v37, 16  ;;  %v2882_v63 = vld [vmem:[%s3323_s2 + $0x80] sm:$0xff] }
  0xfc   : > { %v440_v42 = vpop.f32.mrf.mxu0  ;;  %v1228_v58 = vunpack.c.l.b16 %v828_v48  ;;  %vm2863_vm3 = vmand %vm511_vm1, %vm521_vm2  ;;  %vm1388_vm1 = vcmask 523264   ;;  %vm1405_vm2 = vcmask 785408  }
  0xfd   : > { %v441_v43 = vadd.f32 %v2783_v36, %v440_v42  ;;  %v1284_v9 = vunpack.c.l.b16 %v860_v5 }
  0xff   : > { %v481_v47 = vmax.f32 %v441_v43, 0.0 }
 0x100   : > { %1196 = vrot.lane.b32.xlu1 %v1188_v46, %s2554_s10 }
 0x101   : > { %v562_v49 = vsel %vm2825_vm13, %v481_v47, 0.0  ;;  %v813_v50 = vld [vmem:[#allocation2 + $0x38] sm:$0xff] }
 0x102   : > { %v781_v51 = vld [vmem:[#allocation2 + $0x32] sm:$0xff]  ;;  %v782_v52 = vld [vmem:[#allocation2 + $0x3a] sm:$0xff]  ;;  %604 = vst.msk [vmem:[#allocation2 + $0x49] sm:$0xff] %vm597_vm4, %v562_v49  ;;  %v829_v53 = vpack.c.bf16 %v813_v50, %v813_v50  ;;  %v2872_v49 = vld [vmem:[%s3323_s2 + $0x88] sm:$0xff] }
 0x103   : > { %v797_v54 = vpack.c.bf16 %v781_v51, %v781_v51  ;;  %v798_v55 = vpack.c.bf16 %v782_v52, %v782_v52  ;;  %v845_v56 = vld [vmem:[#allocation2 + $0x39] sm:$0xff]  ;;  %2262 = vmatpush.bf16.msra.mxu3 %v2872_v49 }
 0x104   : > { %v442_v57 = vpop.f32.mrf.mxu0  ;;  %v1229_v59 = vunpack.c.l.b16 %v829_v53  ;;  %v861_v2 = vpack.c.bf16 %v845_v56, %v845_v56 }
 0x105   : > { %v1174_v60 = vunpack.c.l.b16 %v797_v54  ;;  %v1175_v61 = vunpack.c.l.b16 %v798_v55  ;;  %v443_v62 = vadd.f32 %v2783_v36, %v442_v57 }
 0x106   : > { %v1244_v0 = vpack.c.b16 %v1229_v59, %v1228_v58  ;;  %v1285_v7 = vunpack.c.l.b16 %v861_v2 }
 0x107   : > { %v1189_v1 = vpack.c.b16 %v1175_v61, %v1174_v60  ;;  %v482_v3 = vmax.f32 %v443_v62, 0.0  ;;  %2264 = vmatpush.bf16.msra.mxu3 %v2882_v63 }
 0x108   : > { %1252 = vrot.lane.b32.xlu2 %v1244_v0, %s2555_s21  ;;  %1046 = vrot.lane.b32.xlu1 %v1188_v46, %s2555_s21  ;;  %v1300_v13 = vpack.c.b16 %v1285_v7, %v1284_v9 }
 0x109   : > { %v563_v6 = vsel %vm2825_vm13, %v482_v3, 0.0  ;;  %1198 = vrot.lane.b32.xlu0 %v1189_v1, %s2554_s10  ;;  %v814_v11 = vld [vmem:[#allocation2 + $0x48] sm:$0xff] }
 0x10a   : > { %605 = vst.msk [vmem:[#allocation2 + $0x51] sm:$0xff] %vm597_vm4, %v563_v6  ;;  %v830_v15 = vpack.c.bf16 %v814_v11, %v814_v11  ;;  %v846_v30 = vld [vmem:[#allocation2 + $0x49] sm:$0xff]  ;;  %v502_v6 = vadd.s32 6, %v2776_v33 }
 0x10b   : > { %v862_v38 = vpack.c.bf16 %v846_v30, %v846_v30 }
 0x10c   : > { %v445_v8 = vpop.f32.mrf.mxu0  ;;  %v1230_v25 = vunpack.c.l.b16 %v830_v15  ;;  %vm512_vm5 = vcmp.ge.s32.totalorder %v502_v6, 0  ;;  %vm522_vm6 = vcmp.lt.s32.totalorder %v502_v6, 16 }
 0x10d   : > { %v446_v10 = vadd.f32 %v2783_v36, %v445_v8  ;;  %v1286_v42 = vunpack.c.l.b16 %v862_v38  ;;  %vm2900_vm7 = vmand %vm512_vm5, %vm522_vm6 }
 0x10f   : > { %v483_v14 = vmax.f32 %v446_v10, 0.0 }
 0x110   : > { %1308 = vrot.lane.b32.xlu2 %v1300_v13, %s2556_s29 }
 0x111   : > { %v564_v16 = vsel %vm2842_vm0, %v483_v14, 0.0  ;;  %992 = vrot.lane.b32.xlu0 %v1300_v13, %s2554_s10  ;;  %v815_v17 = vld [vmem:[#allocation2 + $0x50] sm:$0xff] }
 0x112   : > { %v783_v18 = vld [vmem:[#allocation2 + $0x4a] sm:$0xff]  ;;  %v784_v19 = vld [vmem:[#allocation2 + $0x52] sm:$0xff]  ;;  %606 = vst.msk [vmem:[#allocation2 + $0x61] sm:$0xff] %vm597_vm4, %v564_v16  ;;  %v831_v20 = vpack.c.bf16 %v815_v17, %v815_v17 }
 0x113   : > { %v799_v21 = vpack.c.bf16 %v783_v18, %v783_v18  ;;  %v800_v22 = vpack.c.bf16 %v784_v19, %v784_v19  ;;  %v847_v23 = vld [vmem:[#allocation2 + $0x51] sm:$0xff] }
 0x114   : > { %v447_v24 = vpop.f32.mrf.mxu0  ;;  %v1231_v26 = vunpack.c.l.b16 %v831_v20  ;;  %v863_v34 = vpack.c.bf16 %v847_v23, %v847_v23  ;;  %v2246_v19 = vld [vmem:[%s3323_s2 + $0x30] sm:$0xff] }
 0x115   : > { %v1176_v27 = vunpack.c.l.b16 %v799_v21  ;;  %v1177_v28 = vunpack.c.l.b16 %v800_v22  ;;  %v448_v29 = vadd.f32 %v2783_v36, %v447_v24  ;;  %1667 = vmatpush.bf16.msra.mxu1 %v2246_v19  ;;  %v2251_v19 = vld [vmem:[%s3323_s2 + $0x58] sm:$0xff] }
 0x116   : > { %v1245_v31 = vpack.c.b16 %v1231_v26, %v1230_v25  ;;  %v1287_v40 = vunpack.c.l.b16 %v863_v34  ;;  %v2245_v34 = vld [vmem:[%s3323_s2 + $0x28] sm:$0xff] }
 0x117   : > { %v2852_v32 = vpack.c.b16 %v1177_v28, %v1176_v27  ;;  %v484_v35 = vmax.f32 %v448_v29, 0.0 }
 0x118   : > { %1102 = vrot.lane.b32.xlu2 %v1244_v0, %s2556_s29  ;;  %1254 = vrot.lane.b32.xlu1 %v1245_v31, %s2555_s21  ;;  %v1301_v46 = vpack.c.b16 %v1287_v40, %v1286_v42 }
 0x119   : > { %v565_v39 = vsel %vm2842_vm0, %v484_v35, 0.0  ;;  %1200 = vrot.lane.b32.xlu0 %v2852_v32, %s2554_s10  ;;  %v816_v44 = vld [vmem:[#allocation2 + $0x60] sm:$0xff]  ;;  %1668 = vmatpush.bf16.msra.mxu1 %v2245_v34  ;;  %v2249_v34 = vld [vmem:[%s3323_s2 + $0x48] sm:$0xff] }
 0x11a   : > { %607 = vst.msk [vmem:[#allocation2 + $0x69] sm:$0xff] %vm597_vm4, %v565_v39  ;;  %v832_v48 = vpack.c.bf16 %v816_v44, %v816_v44 }
 0x11c   : > { %v450_v41 = vpop.f32.mrf.mxu0  ;;  %v1232_v59 = vunpack.c.l.b16 %v832_v48  ;;  %v2254_v48 = vld [vmem:[%s3323_s2 + $0x70] sm:$0xff] }
 0x11d   : > { %v451_v43 = vadd.f32 %v2783_v36, %v450_v41  ;;  %v2255_v41 = vld [vmem:[%s3323_s2 + $0x78] sm:$0xff]  ;;  %1669 = vmatpush.bf16.msra.mxu1 %v2244_v45 }
 0x11e   : > { %1715 = vmatpush.bf16.msra.mxu2 %v2255_v41 }
 0x11f   : > { %v485_v47 = vmax.f32 %v451_v43, 0.0  ;;  %v503_v43 = vadd.s32 7, %v2776_v33 }
 0x120   : > { %1310 = vrot.lane.b32.xlu2 %v1301_v46, %s2556_s29  ;;  %1048 = vrot.lane.b32.xlu1 %v1189_v1, %s2555_s21  ;;  %v848_v1 = vld [vmem:[#allocation2 + $0x61] sm:$0xff] }
 0x121   : > { %v566_v50 = vsel %vm2863_vm3, %v485_v47, 0.0  ;;  %994 = vrot.lane.b32.xlu0 %v1301_v46, %s2554_s10  ;;  %v817_v51 = vld [vmem:[#allocation2 + $0x68] sm:$0xff]  ;;  %v864_v7 = vpack.c.bf16 %v848_v1, %v848_v1  ;;  %vm513_vm8 = vcmp.ge.s32.totalorder %v503_v43, 0  ;;  %vm523_vm9 = vcmp.lt.s32.totalorder %v503_v43, 16 }
 0x122   : > { %v785_v52 = vld [vmem:[#allocation2 + $0x62] sm:$0xff]  ;;  %v786_v53 = vld [vmem:[#allocation2 + $0x6a] sm:$0xff]  ;;  %608 = vst.msk [vmem:[#allocation2 + $0x79] sm:$0xff] %vm597_vm4, %v566_v50  ;;  %v833_v54 = vpack.c.bf16 %v817_v51, %v817_v51  ;;  %1716 = vmatpush.bf16.msra.mxu2 %v2254_v48  ;;  %vm2948_vm10 = vmand %vm513_vm8, %vm523_vm9 }
 0x123   : > { %v801_v55 = vpack.c.bf16 %v785_v52, %v785_v52  ;;  %v802_v56 = vpack.c.bf16 %v786_v53, %v786_v53  ;;  %v849_v57 = vld [vmem:[#allocation2 + $0x69] sm:$0xff]  ;;  %v1288_v11 = vunpack.c.l.b16 %v864_v7  ;;  %v2243_v52 = vld [vmem:[%s3323_s2 + $0x18] sm:$0xff]  ;;  %v2248_v48 = vld [vmem:[%s3323_s2 + $0x40] sm:$0xff] }
 0x124   : > { %v452_v58 = vpop.f32.mrf.mxu0  ;;  %v1233_v60 = vunpack.c.l.b16 %v833_v54  ;;  %v865_v4 = vpack.c.bf16 %v849_v57, %v849_v57  ;;  %1670 = vmatpush.bf16.msra.mxu1 %v2243_v52  ;;  %v2253_v57 = vld [vmem:[%s3323_s2 + $0x68] sm:$0xff] }
 0x125   : > { %v1178_v61 = vunpack.c.l.b16 %v801_v55  ;;  %v1179_v62 = vunpack.c.l.b16 %v802_v56  ;;  %v453_v0 = vadd.f32 %v2783_v36, %v452_v58 }
 0x126   : > { %v1246_v2 = vpack.c.b16 %v1233_v60, %v1232_v59  ;;  %v1289_v9 = vunpack.c.l.b16 %v865_v4  ;;  %v2242_v60 = vld [vmem:[%s3323_s2 + $0x10] sm:$0xff]  ;;  %1717 = vmatpush.bf16.msra.mxu2 %v2253_v57 }
 0x127   : > { %v2885_v3 = vpack.c.b16 %v1179_v62, %v1178_v61  ;;  %v486_v5 = vmax.f32 %v453_v0, 0.0 }
 0x128   : > { %1104 = vrot.lane.b32.xlu2 %v1245_v31, %s2556_s29  ;;  %1256 = vrot.lane.b32.xlu1 %v1246_v2, %s2555_s21  ;;  %v2904_v16 = vpack.c.b16 %v1289_v9, %v1288_v11 }
 0x129   : > { %v567_v8 = vsel %vm2863_vm3, %v486_v5, 0.0  ;;  %1202 = vrot.lane.b32.xlu0 %v2885_v3, %s2554_s10  ;;  %v818_v14 = vld [vmem:[#allocation2 + $0x78] sm:$0xff]  ;;  %1671 = vmatpush.bf16.msra.mxu1 %v2242_v60  ;;  %v2252_v5 = vld [vmem:[%s3323_s2 + $0x60] sm:$0xff] }
 0x12a   : > { %609 = vst.msk [vmem:[#allocation2 + $0x81] sm:$0xff] %vm597_vm4, %v567_v8  ;;  %v834_v18 = vpack.c.bf16 %v818_v14, %v818_v14  ;;  %v850_v37 = vld [vmem:[#allocation2 + $0x79] sm:$0xff]  ;;  %1718 = vmatpush.bf16.msra.mxu2 %v2252_v5 }
 0x12b   : > { %v866_v44 = vpack.c.bf16 %v850_v37, %v850_v37 }
 0x12c   : > { %v455_v10 = vpop.f32.mrf.mxu0  ;;  %v1234_v29 = vunpack.c.l.b16 %v834_v18 }
 0x12d   : > { %v456_v13 = vadd.f32 %v2783_v36, %v455_v10  ;;  %v1290_v51 = vunpack.c.l.b16 %v866_v44  ;;  %1672 = vmatpush.bf16.msra.mxu1 %v2241_v12 }
 0x12e   : > { %1719 = vmatpush.bf16.msra.mxu2 %v2251_v19 }
 0x12f   : > { %v487_v17 = vmax.f32 %v456_v13, 0.0 }
 0x130   : > { %1312 = vrot.lane.b32.xlu2 %v2904_v16, %s2556_s29  ;;  %1050 = vrot.lane.b32.xlu1 %v2852_v32, %s2555_s21 }
 0x131   : > { %v568_v20 = vsel %vm2900_vm7, %v487_v17, 0.0  ;;  %996 = vrot.lane.b32.xlu0 %v2904_v16, %s2554_s10  ;;  %v819_v21 = vld [vmem:[#allocation2 + $0x80] sm:$0xff] }
 0x132   : > { %v787_v22 = vld [vmem:[#allocation2 + $0x7a] sm:$0xff]  ;;  %v788_v23 = vld [vmem:[#allocation2 + $0x82] sm:$0xff]  ;;  %610 = vst.msk [vmem:[#allocation2 + $0x91] sm:$0xff] %vm597_vm4, %v568_v20  ;;  %v835_v24 = vpack.c.bf16 %v819_v21, %v819_v21  ;;  %v504_v21 = vadd.s32 8, %v2776_v33 }
 0x133   : > { %v803_v25 = vpack.c.bf16 %v787_v22, %v787_v22  ;;  %v804_v26 = vpack.c.bf16 %v788_v23, %v788_v23  ;;  %v851_v27 = vld [vmem:[#allocation2 + $0x81] sm:$0xff] }
 0x134   : > { %v457_v28 = vpop.f32.mrf.mxu0  ;;  %v1235_v30 = vunpack.c.l.b16 %v835_v24  ;;  %v867_v40 = vpack.c.bf16 %v851_v27, %v851_v27  ;;  %v2240_v23 = vld [vmem:[%s3323_s2] sm:$0xff]  ;;  %vm514_vm11 = vcmp.ge.s32.totalorder %v504_v21, 0  ;;  %vm524_vm12 = vcmp.lt.s32.totalorder %v504_v21, 16 }
 0x135   : > { %v1180_v31 = vunpack.c.l.b16 %v803_v25  ;;  %v1181_v32 = vunpack.c.l.b16 %v804_v26  ;;  %v458_v35 = vadd.f32 %v2783_v36, %v457_v28  ;;  %1673 = vmatpush.bf16.msra.mxu1 %v2240_v23  ;;  %v2250_v26 = vld [vmem:[%s3323_s2 + $0x50] sm:$0xff]  ;;  %vm3003_vm13 = vmand %vm514_vm11, %vm524_vm12 }
 0x136   : > { %v2922_v38 = vpack.c.b16 %v1235_v30, %v1234_v29  ;;  %v1291_v47 = vunpack.c.l.b16 %v867_v40  ;;  %1720 = vmatpush.bf16.msra.mxu2 %v2250_v26 }
 0x137   : > { %v2924_v39 = vpack.c.b16 %v1181_v32, %v1180_v31  ;;  %v488_v42 = vmax.f32 %v458_v35, 0.0 }
 0x138   : > { %1106 = vrot.lane.b32.xlu2 %v1246_v2, %s2556_s29  ;;  %1258 = vrot.lane.b32.xlu1 %v2922_v38, %s2555_s21  ;;  %v2952_v56 = vpack.c.b16 %v1291_v47, %v1290_v51 }
 0x139   : > { %v569_v46 = vsel %vm2900_vm7, %v488_v42, 0.0  ;;  %1204 = vrot.lane.b32.xlu0 %v2924_v39, %s2554_s10  ;;  %v820_v54 = vld [vmem:[#allocation2 + $0x90] sm:$0xff]  ;;  %1770 = vmatpush.bf16.msrb.mxu1 %v2872_v49 }
 0x13a   : > { %611 = vst.msk [vmem:[#allocation2 + $0x99] sm:$0xff] %vm597_vm4, %v569_v46  ;;  %v836_v59 = vpack.c.bf16 %v820_v54, %v820_v54  ;;  %v852_v14 = vld [vmem:[#allocation2 + $0x91] sm:$0xff]  ;;  %1721 = vmatpush.bf16.msra.mxu2 %v2249_v34 }
 0x13b   : > { %v868_v22 = vpack.c.bf16 %v852_v14, %v852_v14 }
 0x13c   : > { %v460_v50 = vpop.f32.mrf.mxu0  ;;  %v1236_v10 = vunpack.c.l.b16 %v836_v59 }
 0x13d   : > { %v461_v53 = vadd.f32 %v2783_v36, %v460_v50  ;;  %v1292_v28 = vunpack.c.l.b16 %v868_v22  ;;  %1771 = vmatpush.bf16.msrb.mxu1 %v2882_v63 }
 0x13e   : > { %1722 = vmatpush.bf16.msra.mxu2 %v2248_v48 }
 0x13f   : > { %v489_v58 = vmax.f32 %v461_v53, 0.0 }
 0x140   : > { %1314 = vrot.lane.b32.xlu2 %v2952_v56, %s2556_s29  ;;  %1052 = vrot.lane.b32.xlu1 %v2885_v3, %s2555_s21 }
 0x141   : > { %v570_v61 = vsel %vm2948_vm10, %v489_v58, 0.0  ;;  %998 = vrot.lane.b32.xlu0 %v2952_v56, %s2554_s10  ;;  %v884_v62 = vld [vmem:[#allocation2 + $0x92] sm:$0xff]  ;;  %v885_v0 = vld [vmem:[#allocation2 + $0x9a] sm:$0xff] }
 0x142   : > { %v821_v1 = vld [vmem:[#allocation2 + $0x98] sm:$0xff]  ;;  %612 = vst.msk [vmem:[#allocation2 + $0xa9] sm:$0xff] %vm597_vm4, %v570_v61  ;;  %v900_v2 = vpack.c.bf16 %v884_v62, %v884_v62  ;;  %v901_v4 = vpack.c.bf16 %v885_v0, %v885_v0  ;;  %v505_v61 = vadd.s32 9, %v2776_v33  ;;  %2261 = vmatpush.bf16.msrb.mxu2 %v2872_v49  ;;  %v619_v49 = vld [vmem:[#allocation2 + $0x8] sm:$0xff] }
 0x143   : > { %v837_v3 = vpack.c.bf16 %v821_v1, %v821_v1  ;;  %v853_v6 = vld [vmem:[#allocation2 + $0x99] sm:$0xff] }
 0x144   : > { %v462_v7 = vpop.f32.mrf.mxu0  ;;  %v1348_v8 = vunpack.c.l.b16 %v900_v2  ;;  %v1349_v9 = vunpack.c.l.b16 %v901_v4  ;;  %v869_v18 = vpack.c.bf16 %v853_v6, %v853_v6  ;;  %vm515_vm14 = vcmp.ge.s32.totalorder %v505_v61, 0  ;;  %v618_v6 = vld [vmem:[#allocation2] sm:$0xff] }
 0x145   : > { %v1237_v11 = vunpack.c.l.b16 %v837_v3  ;;  %v463_v13 = vadd.f32 %v2783_v36, %v462_v7  ;;  %vm525_vm15 = vcmp.lt.s32.totalorder %v505_v61, 16 }
 0x146   : > { %v2976_v15 = vpack.c.b16 %v1349_v9, %v1348_v8  ;;  %v1293_v25 = vunpack.c.l.b16 %v869_v18  ;;  %2263 = vmatpush.bf16.msrb.mxu2 %v2882_v63  ;;  %vm3045_vm0 = vmand %vm515_vm14, %vm525_vm15  ;;  %v635_v9 = vpack.c.bf16 %v619_v49, %v619_v49 }
 0x147   : > { %v2978_v17 = vpack.c.b16 %v1237_v11, %v1236_v10  ;;  %v490_v20 = vmax.f32 %v463_v13, 0.0  ;;  %v634_v11 = vpack.c.bf16 %v618_v6, %v618_v6 }
 0x148   : > { %2204 = vmatmul.msk.bf16.vlgmr.msra.gmra.mxu3 %vm597_vm4, %v2976_v15  ;;  %1108 = vrot.lane.b32.xlu2 %v2922_v38, %s2556_s29  ;;  %v3007_v32 = vpack.c.b16 %v1293_v25, %v1292_v28  ;;  %v925_v23 = vunpack.c.l.b16 %v635_v9 }
 0x149   : > { %v571_v24 = vsel %vm2948_vm10, %v490_v20, 0.0  ;;  %1260 = vrot.lane.b32.xlu1 %v2978_v17, %s2555_s21  ;;  %1206 = vrot.lane.b32.xlu0 %v2976_v15, %s2554_s10  ;;  %v822_v30 = vld [vmem:[#allocation2 + $0xa8] sm:$0xff] }
 0x14a   : > { %613 = vst.msk [vmem:[#allocation2 + $0xb1] sm:$0xff] %vm597_vm4, %v571_v24  ;;  %v838_v37 = vpack.c.bf16 %v822_v30, %v822_v30  ;;  %v854_v55 = vld [vmem:[#allocation2 + $0xa9] sm:$0xff] }
 0x14b   : > { %v870_v62 = vpack.c.bf16 %v854_v55, %v854_v55 }
 0x14c   : > { %v465_v27 = vpop.f32.mrf.mxu0  ;;  %v1238_v52 = vunpack.c.l.b16 %v838_v37 }
 0x14d   : > { %v466_v29 = vadd.f32 %v2783_v36, %v465_v27  ;;  %v1294_v2 = vunpack.c.l.b16 %v870_v62  ;;  %v620_v62 = vld [vmem:[#allocation2 + $0x18] sm:$0xff] }
 0x14f   : > { %v491_v35 = vmax.f32 %v466_v29, 0.0  ;;  %v924_v29 = vunpack.c.l.b16 %v634_v11 }
 0x150   : > { %1316 = vrot.lane.b32.xlu2 %v3007_v32, %s2556_s29 }
 0x151   : > { %v572_v40 = vsel %vm3003_vm13, %v491_v35, 0.0  ;;  %1054 = vrot.lane.b32.xlu1 %v2924_v39, %s2555_s21  ;;  %1000 = vrot.lane.b32.xlu0 %v3007_v32, %s2554_s10  ;;  %v886_v41 = vld [vmem:[#allocation2 + $0xaa] sm:$0xff]  ;;  %v887_v42 = vld [vmem:[#allocation2 + $0xb2] sm:$0xff] }
 0x152   : > { %v823_v43 = vld [vmem:[#allocation2 + $0xb0] sm:$0xff]  ;;  %614 = vst.msk [vmem:[#allocation2 + $0xc1] sm:$0xff] %vm597_vm4, %v572_v40  ;;  %v902_v44 = vpack.c.bf16 %v886_v41, %v886_v41  ;;  %v903_v45 = vpack.c.bf16 %v887_v42, %v887_v42  ;;  %v748_v40 = vld [vmem:[#allocation2 + $0x21] sm:$0xff]  ;;  %v940_v41 = vpack.c.b16 %v925_v23, %v924_v29 }
 0x153   : > { %v839_v46 = vpack.c.bf16 %v823_v43, %v823_v43  ;;  %v855_v47 = vld [vmem:[#allocation2 + $0xb1] sm:$0xff] }
 0x154   : > { %v467_v50 = vpop.f32.mrf.mxu0  ;;  %v1350_v51 = vunpack.c.l.b16 %v902_v44  ;;  %v1351_v39 = vunpack.c.l.b16 %v903_v45  ;;  %v871_v59 = vpack.c.bf16 %v855_v47, %v855_v47  ;;  %v747_v45 = vld [vmem:[#allocation2 + $0x19] sm:$0xff]  ;;  %v764_v47 = vpack.c.bf16 %v748_v40, %v748_v40 }
 0x155   : > { %v1239_v53 = vunpack.c.l.b16 %v839_v46  ;;  %v468_v54 = vadd.f32 %v2783_v36, %v467_v50 }
 0x156   : > { %v3026_v57 = vpack.c.b16 %v1351_v39, %v1350_v51  ;;  %v1295_v33 = vunpack.c.l.b16 %v871_v59 }
 0x157   : > { %v3028_v58 = vpack.c.b16 %v1239_v53, %v1238_v52  ;;  %v492_v60 = vmax.f32 %v468_v54, 0.0  ;;  %v763_v53 = vpack.c.bf16 %v747_v45, %v747_v45  ;;  %v621_v54 = vld [vmem:[#allocation2 + $0x20] sm:$0xff]  ;;  %v749_v45 = vld [vmem:[#allocation2 + $0x31] sm:$0xff] }
 0x158   : > { %2205 = vmatmul.msk.bf16.gmra.mxu3 %vm597_vm4, %v3026_v57  ;;  %1110 = vrot.lane.b32.xlu2 %v2978_v17, %s2556_s29  ;;  %v3049_v8 = vpack.c.b16 %v1295_v33, %v1294_v2 }
 0x159   : > { %v573_v0 = vsel %vm3003_vm13, %v492_v60, 0.0  ;;  %1262 = vrot.lane.b32.xlu1 %v3028_v58, %s2555_s21  ;;  %1208 = vrot.lane.b32.xlu0 %v3026_v57, %s2554_s10  ;;  %v824_v5 = vld [vmem:[#allocation2 + $0xc0] sm:$0xff]  ;;  %v1133_v60 = vunpack.c.l.b16 %v764_v47  ;;  %v1132_v33 = vunpack.c.l.b16 %v763_v53 }
 0x15a   : > { %615 = vst.msk [vmem:[#allocation2 + $0xc9] sm:$0xff] %vm597_vm4, %v573_v0  ;;  %v989_v4 = vpop.permute.xlu0 %988  ;;  %v840_v63 = vpack.c.bf16 %v824_v5, %v824_v5  ;;  %v856_v31 = vld [vmem:[#allocation2 + $0xc1] sm:$0xff]  ;;  %v637_v0 = vpack.c.bf16 %v621_v54, %v621_v54  ;;  %v636_v5 = vpack.c.bf16 %v620_v62, %v620_v62 }
 0x15b   : > { %v872_v44 = vpack.c.bf16 %v856_v31, %v856_v31 }
 0x15c   : > { %v470_v1 = vpop.f32.mrf.mxu0  ;;  %v1240_v28 = vunpack.c.l.b16 %v840_v63  ;;  %v927_v11 = vunpack.c.l.b16 %v637_v0 }
 0x15d   : > { %v471_v3 = vadd.f32 %v2783_v36, %v470_v1  ;;  %v1296_v55 = vunpack.c.l.b16 %v872_v44  ;;  %v1148_v1 = vpack.c.b16 %v1133_v60, %v1132_v33 }
 0x15f   : > { %v493_v10 = vmax.f32 %v471_v3, 0.0 }
 0x160   : > { %1318 = vrot.lane.b32.xlu2 %v3049_v8, %s2556_s29 }
 0x161   : > { %v574_v12 = vsel %vm3045_vm0, %v493_v10, 0.0  ;;  %1056 = vrot.lane.b32.xlu1 %v2976_v15, %s2555_s21  ;;  %1002 = vrot.lane.b32.xlu0 %v3049_v8, %s2554_s10  ;;  %v888_v13 = vld [vmem:[#allocation2 + $0xc2] sm:$0xff]  ;;  %v889_v14 = vld [vmem:[#allocation2 + $0xca] sm:$0xff] }
 0x162   : > { %v825_v18 = vld [vmem:[#allocation2 + $0xc8] sm:$0xff]  ;;  %616 = vst.msk [vmem:[#allocation2 + $0xd9] sm:$0xff] %vm597_vm4, %v574_v12  ;;  %v3060_v19 = vpop.permute.xlu2 %1252  ;;  %v904_v20 = vpack.c.bf16 %v888_v13, %v888_v13  ;;  %v905_v21 = vpack.c.bf16 %v889_v14, %v889_v14  ;;  %v1045_v42 = vpop.permute.xlu0 %1044 }
 0x163   : > { %v841_v22 = vpack.c.bf16 %v825_v18, %v825_v18  ;;  %v857_v24 = vld [vmem:[#allocation2 + $0xc9] sm:$0xff] }
 0x164   : > { %v472_v25 = vpop.f32.mrf.mxu0  ;;  %v1352_v26 = vunpack.c.l.b16 %v904_v20  ;;  %v1353_v27 = vunpack.c.l.b16 %v905_v21  ;;  %v873_v37 = vpack.c.bf16 %v857_v24, %v857_v24 }
 0x165   : > { %v1241_v15 = vunpack.c.l.b16 %v841_v22  ;;  %v473_v30 = vadd.f32 %v2783_v36, %v472_v25  ;;  %v1366_v36 = vsel %vm597_vm4, %v940_v41, %v989_v4  ;;  %v926_v25 = vunpack.c.l.b16 %v636_v5 }
 0x166   : > { %v1362_v34 = vpack.c.b16 %v1353_v27, %v1352_v26  ;;  %v1390_v48 = vsel %vm1388_vm1, %v1366_v36, %v1045_v42  ;;  %v1297_v39 = vunpack.c.l.b16 %v873_v37 }
 0x167   : > { %v3063_v35 = vpack.c.b16 %v1241_v15, %v1240_v28  ;;  %v494_v43 = vmax.f32 %v473_v30, 0.0  ;;  %v941_v15 = vpack.c.b16 %v927_v11, %v926_v25 }
 0x168   : > { %2206 = vmatmul.msk.bf16.gmra.mxu3 %vm597_vm4, %v1362_v34  ;;  %1112 = vrot.lane.b32.xlu2 %v3028_v58, %s2556_s29  ;;  %v3077_v61 = vpack.c.b16 %v1297_v39, %v1296_v55  ;;  %v622_v39 = vld [vmem:[#allocation2 + $0x30] sm:$0xff] }
 0x169   : > { %v575_v46 = vsel %vm3045_vm0, %v494_v43, 0.0  ;;  %1264 = vrot.lane.b32.xlu1 %v3063_v35, %s2555_s21  ;;  %1210 = vrot.lane.b32.xlu0 %v1362_v34, %s2554_s10  ;;  %v826_v59 = vld [vmem:[#allocation2 + $0xd8] sm:$0xff]  ;;  %v638_v55 = vpack.c.bf16 %v622_v39, %v622_v39 }
 0x16a   : > { %617 = vst.msk [vmem:[#allocation2 + $0xe1] sm:$0xff] %vm597_vm4, %v575_v46  ;;  %v1309_v50 = vpop.permute.xlu2 %1308  ;;  %v1101_v51 = vpop.permute.xlu1 %1100  ;;  %v842_v49 = vpack.c.bf16 %v826_v59, %v826_v59  ;;  %v858_v24 = vld [vmem:[#allocation2 + $0xd9] sm:$0xff] }
 0x16b   : > { %v1407_v52 = vsel %vm1405_vm2, %v1390_v48, %v1101_v51  ;;  %v991_v12 = vpop.permute.xlu0 %990  ;;  %v874_v29 = vpack.c.bf16 %v858_v24, %v858_v24  ;;  %v750_v43 = vld [vmem:[#allocation2 + $0x39] sm:$0xff] }
 0x16c   : > { %1674 = vmatmul.bf16.vlgmr.msra.gmra.mxu1 %v1407_v52  ;;  %v1242_v14 = vunpack.c.l.b16 %v842_v49  ;;  %v766_v36 = vpack.c.bf16 %v750_v43, %v750_v43  ;;  %v626_v43 = vld [vmem:[#allocation2 + $0x60] sm:$0xff] }
 0x16d   : > { %v1298_v42 = vunpack.c.l.b16 %v874_v29 }
 0x16e   : > { %v1135_v48 = vunpack.c.l.b16 %v766_v36  ;;  %v642_v36 = vpack.c.bf16 %v626_v43, %v626_v43  ;;  %v878_v43 = vld [vmem:[#allocation2 + $0x4a] sm:$0xff] }
 0x170   : > { %1320 = vrot.lane.b32.xlu2 %v3077_v61, %s2556_s29 }
 0x171   : > { %1058 = vrot.lane.b32.xlu1 %v3026_v57, %s2555_s21  ;;  %v890_v2 = vld [vmem:[#allocation2 + $0xda] sm:$0xff]  ;;  %v891_v4 = vld [vmem:[#allocation2 + $0xe2] sm:$0xff] }
 0x172   : > { %v827_v3 = vld [vmem:[#allocation2 + $0xe0] sm:$0xff]  ;;  %v1103_v6 = vpop.permute.xlu2 %1102  ;;  %v1197_v7 = vpop.permute.xlu1 %1196  ;;  %v906_v9 = vpack.c.bf16 %v890_v2, %v890_v2  ;;  %v907_v10 = vpack.c.bf16 %v891_v4, %v891_v4  ;;  %v928_v2 = vunpack.c.l.b16 %v638_v55  ;;  %v751_v4 = vld [vmem:[#allocation2 + $0x49] sm:$0xff] }
 0x173   : > { %v843_v63 = vpack.c.bf16 %v827_v3, %v827_v3  ;;  %v1432_v13 = vsel %vm597_vm4, %v1148_v1, %v1197_v7  ;;  %v859_v18 = vld [vmem:[#allocation2 + $0xe1] sm:$0xff]  ;;  %v752_v1 = vld [vmem:[#allocation2 + $0x51] sm:$0xff]  ;;  %v767_v7 = vpack.c.bf16 %v751_v4, %v751_v4 }
 0x174   : > { %v1455_v20 = vsel %vm1388_vm1, %v1432_v13, %v3060_v19  ;;  %v1354_v57 = vunpack.c.l.b16 %v906_v9  ;;  %v1355_v21 = vunpack.c.l.b16 %v907_v10  ;;  %v875_v28 = vpack.c.bf16 %v859_v18, %v859_v18 }
 0x175   : > { %v1243_v22 = vunpack.c.l.b16 %v843_v63  ;;  %v1471_v23 = vsel %vm1405_vm2, %v1455_v20, %v1309_v50  ;;  %v1369_v19 = vsel %vm597_vm4, %v941_v15, %v991_v12  ;;  %v623_v50 = vld [vmem:[#allocation2 + $0x38] sm:$0xff]  ;;  %v768_v5 = vpack.c.bf16 %v752_v1, %v752_v1  ;;  %v624_v20 = vld [vmem:[#allocation2 + $0x48] sm:$0xff] }
 0x176   : > { %1723 = vmatmul.bf16.vlgmr.msra.gmra.mxu2 %v1471_v23  ;;  %v1363_v26 = vpack.c.b16 %v1355_v21, %v1354_v57  ;;  %v1299_v34 = vunpack.c.l.b16 %v875_v28  ;;  %v639_v53 = vpack.c.bf16 %v623_v50, %v623_v50  ;;  %v1136_v18 = vunpack.c.l.b16 %v767_v7 }
 0x177   : > { %v1251_v27 = vpack.c.b16 %v1243_v22, %v1242_v14  ;;  %v1137_v12 = vunpack.c.l.b16 %v768_v5  ;;  %v625_v14 = vld [vmem:[#allocation2 + $0x50] sm:$0xff]  ;;  %v640_v23 = vpack.c.bf16 %v624_v20, %v624_v20 }
 0x178   : > { %2207 = vmatmul.msk.bf16.gmra.mxu3 %vm597_vm4, %v1363_v26  ;;  %1114 = vrot.lane.b32.xlu2 %v3063_v35, %s2556_s29  ;;  %v1307_v44 = vpack.c.b16 %v1299_v34, %v1298_v42  ;;  %v765_v35 = vpack.c.bf16 %v749_v45, %v749_v45  ;;  %v929_v33 = vunpack.c.l.b16 %v639_v53  ;;  %v641_v21 = vpack.c.bf16 %v625_v14, %v625_v14 }
 0x179   : > { %1266 = vrot.lane.b32.xlu1 %v1251_v27, %s2555_s21  ;;  %v1150_v57 = vpack.c.b16 %v1137_v12, %v1136_v18  ;;  %v930_v29 = vunpack.c.l.b16 %v640_v23 }
 0x17a   : > { %v1311_v30 = vpop.permute.xlu2 %1310  ;;  %v1047_v31 = vpop.permute.xlu1 %1046  ;;  %v1134_v51 = vunpack.c.l.b16 %v765_v35  ;;  %v942_v3 = vpack.c.b16 %v929_v33, %v928_v2  ;;  %v931_v27 = vunpack.c.l.b16 %v641_v21 }
 0x17b   : > { %v1392_v37 = vsel %vm1388_vm1, %v1369_v19, %v1047_v31  ;;  %v1199_v40 = vpop.permute.xlu0 %1198 }
 0x17c   : > { %v1410_v41 = vsel %vm1405_vm2, %v1392_v37, %v1103_v6  ;;  %v1149_v52 = vpack.c.b16 %v1135_v48, %v1134_v51  ;;  %v943_v19 = vpack.c.b16 %v931_v27, %v930_v29  ;;  %v932_v51 = vunpack.c.l.b16 %v642_v36 }
 0x17d   : > { %1679 = vmatmul.bf16.gmra.mxu1 %v1410_v41  ;;  %v627_v41 = vld [vmem:[#allocation2 + $0x68] sm:$0xff]  ;;  %v894_v36 = vpack.c.bf16 %v878_v43, %v878_v43 }
 0x17e   : > { %v1435_v54 = vsel %vm597_vm4, %v1149_v52, %v1199_v40 }
 0x180   : > { %1322 = vrot.lane.b32.xlu2 %v1307_v44, %s2556_s29  ;;  %v643_v44 = vpack.c.bf16 %v627_v41, %v627_v41  ;;  %s1993_s29 = scalar_lea.hbm %s3328_s7, %s2228_s12 }
 0x181   : > { %s1996_s8 = sshll.u32 %s1993_s29, 4  ;;  %s1997_s8 = int_to_ptr.hbm [resolvable:$true] %s1996_s8 }
 0x182   : > { %v1105_v46 = vpop.permute.xlu2 %1104  ;;  %s2441_s22 = sshra.s32 %s1997_s8, 4  ;;  %s2442_s22 = int_to_ptr.hbm [resolvable:$true] %s2441_s22 }
 0x183   : > { %v993_v47 = vpop.permute.xlu0 %992  ;;  %s2443_s16 = scalar_lea.hbm %s2442_s22, 128  ;;  %p2448_p10 = scmp.lt.s32.totalorder %s2442_s22, %s3328_s7 }
 0x184   : > { %v1372_v6 = vsel %vm597_vm4, %v942_v3, %v993_v47  ;;  %v933_v47 = vunpack.c.l.b16 %v643_v44  ;;  %v879_v44 = vld [vmem:[#allocation2 + $0x52] sm:$0xff]  ;;  %p2444_p3 = scmp.ne.s32.totalorder %s2442_s22, %s2443_s16  ;;  %p2449_p11 = scmp.lt.s32.totalorder %s2447_s18, %s2443_s16 }
 0x186   : > { %v944_v39 = vpack.c.b16 %v933_v47, %v932_v51  ;;  %p2445_p7 = pnand %p2444_p3, %p2681_p12  ;;  %p2450_p13 = por %p2449_p11, %p2448_p10 }
 0x188   : > { %p2446_p9 = pneg %p2445_p7 }
 0x18a   : > { %v1313_v59 = vpop.permute.xlu2 %1312  ;;  %v1255_v60 = vpop.permute.xlu1 %1254  ;;  %p2451_p0 = pnand %p2450_p13, %p2446_p9 }
 0x18b   : > { %v1457_v62 = vsel %vm1388_vm1, %v1435_v54, %v1255_v60  ;;  %v1201_v0 = vpop.permute.xlu0 %1200 }
 0x18c   : > { %v1474_v49 = vsel %vm1405_vm2, %v1457_v62, %v1311_v30  ;;  %v1438_v22 = vsel %vm597_vm4, %v1150_v57, %v1201_v0 }
 0x18d   : > { %1728 = vmatmul.bf16.gmra.mxu2 %v1474_v49 }
 0x192   : > { %v1107_v9 = vpop.permute.xlu2 %1106  ;;  %v1049_v10 = vpop.permute.xlu1 %1048 }
 0x193   : > { %v1394_v63 = vsel %vm1388_vm1, %v1372_v6, %v1049_v10  ;;  %v995_v11 = vpop.permute.xlu0 %994 }
 0x194   : > { %v1413_v13 = vsel %vm1405_vm2, %v1394_v63, %v1105_v46  ;;  %v1375_v30 = vsel %vm597_vm4, %v943_v19, %v995_v11 }
 0x195   : > { %1684 = vmatmul.bf16.gmra.mxu1 %v1413_v13 }
 0x19a   : > { %v1257_v24 = vpop.permute.xlu1 %1256  ;;  %v1315_v28 = vpop.permute.xlu2 %1314 }
 0x19b   : > { %v1459_v25 = vsel %vm1388_vm1, %v1438_v22, %v1257_v24  ;;  %v1203_v26 = vpop.permute.xlu0 %1202 }
 0x19c   : > { %v1477_v15 = vsel %vm1405_vm2, %v1459_v25, %v1313_v59  ;;  %v1441_v45 = vsel %vm597_vm4, %v2904_v16, %v1203_v26 }
 0x19d   : > { %1733 = vmatmul.bf16.gmra.mxu2 %v1477_v15  ;;  %v876_v15 = vld [vmem:[#allocation2 + $0x32] sm:$0xff] }
 0x1a2   : > { %v1051_v31 = vpop.permute.xlu1 %1050  ;;  %v1109_v42 = vpop.permute.xlu2 %1108 }
 0x1a3   : > { %v1396_v34 = vsel %vm1388_vm1, %v1375_v30, %v1051_v31  ;;  %v997_v37 = vpop.permute.xlu0 %996 }
 0x1a4   : > { %v1416_v40 = vsel %vm1405_vm2, %v1396_v34, %v1107_v9  ;;  %v1378_v53 = vsel %vm597_vm4, %v944_v39, %v997_v37  ;;  %v892_v37 = vpack.c.bf16 %v876_v15, %v876_v15 }
 0x1a5   : > { %1689 = vmatmul.bf16.gmra.mxu1 %v1416_v40 }
 0x1a6   : > { %v1340_v41 = vunpack.c.l.b16 %v892_v37 }
 0x1aa   : > { %v1259_v35 = vpop.permute.xlu1 %1258  ;;  %v1317_v52 = vpop.permute.xlu2 %1316 }
 0x1ab   : > { %v1461_v46 = vsel %vm1388_vm1, %v1441_v45, %v1259_v35  ;;  %v1205_v48 = vpop.permute.xlu0 %1204  ;;  %v3145_v45 = vld [vmem:[%s3326_s5] ss:$0 sm:$0xff]  ;;  %v895_v35 = vpack.c.bf16 %v879_v44, %v879_v44 }
 0x1ac   : > { %v1480_v50 = vsel %vm1405_vm2, %v1461_v46, %v1315_v28  ;;  %v1444_v62 = vsel %vm597_vm4, %v2952_v56, %v1205_v48  ;;  %v1342_v48 = vunpack.c.l.b16 %v894_v36 }
 0x1ad   : > { %1738 = vmatmul.bf16.gmra.mxu2 %v1480_v50  ;;  %v1343_v50 = vunpack.c.l.b16 %v895_v35 }
 0x1b2   : > { %v1053_v54 = vpop.permute.xlu1 %1052  ;;  %v1111_v60 = vpop.permute.xlu2 %1110 }
 0x1b3   : > { %v1398_v55 = vsel %vm1388_vm1, %v1378_v53, %v1053_v54  ;;  %v999_v16 = vpop.permute.xlu0 %998 }
 0x1b4   : > { %v1419_v59 = vsel %vm1405_vm2, %v1398_v55, %v1109_v42  ;;  %v1381_v2 = vsel %vm597_vm4, %v2922_v38, %v999_v16  ;;  %v881_v16 = vld [vmem:[#allocation2 + $0x6a] sm:$0xff] }
 0x1b5   : > { %1694 = vmatmul.bf16.gmra.mxu1 %v1419_v59  ;;  %v880_v59 = vld [vmem:[#allocation2 + $0x62] sm:$0xff] }
 0x1ba   : > { %v1319_v3 = vpop.permute.xlu2 %1318 }
 0x1bb   : > { %v1261_v0 = vpop.permute.xlu1 %1260  ;;  %v1207_v1 = vpop.permute.xlu0 %1206 }
 0x1bc   : > { %v1463_v33 = vsel %vm1388_vm1, %v1444_v62, %v1261_v0  ;;  %v1447_v56 = vsel %vm597_vm4, %v3007_v32, %v1207_v1  ;;  %v896_v62 = vpack.c.bf16 %v880_v59, %v880_v59  ;;  %v897_v0 = vpack.c.bf16 %v881_v16, %v881_v16 }
 0x1bd   : > { %v1483_v49 = vsel %vm1405_vm2, %v1463_v33, %v1317_v52  ;;  %v1357_v52 = vpack.c.b16 %v1343_v50, %v1342_v48 }
 0x1be   : > { %1743 = vmatmul.bf16.gmra.mxu2 %v1483_v49  ;;  %v1344_v33 = vunpack.c.l.b16 %v896_v62  ;;  %v1345_v49 = vunpack.c.l.b16 %v897_v0 }
 0x1c2   : > { %v1113_v11 = vpop.permute.xlu2 %1112 }
 0x1c3   : > { %v1055_v4 = vpop.permute.xlu1 %1054  ;;  %v1001_v7 = vpop.permute.xlu0 %1000 }
 0x1c4   : > { %v1400_v5 = vsel %vm1388_vm1, %v1381_v2, %v1055_v4  ;;  %v1384_v38 = vsel %vm597_vm4, %v2978_v17, %v1001_v7  ;;  %v1358_v2 = vpack.c.b16 %v1345_v49, %v1344_v33  ;;  %v883_v7 = vld [vmem:[#allocation2 + $0x82] sm:$0xff] }
 0x1c5   : > { %v1422_v6 = vsel %vm1405_vm2, %v1400_v5, %v1111_v60 }
 0x1c6   : > { %1699 = vmatmul.bf16.gmra.mxu1 %v1422_v6  ;;  %v882_v6 = vld [vmem:[#allocation2 + $0x7a] sm:$0xff] }
 0x1ca   : > { %v1321_v20 = vpop.permute.xlu2 %1320 }
 0x1cb   : > { %v1263_v9 = vpop.permute.xlu1 %1262  ;;  %v1209_v13 = vpop.permute.xlu0 %1208 }
 0x1cc   : > { %v1465_v10 = vsel %vm1388_vm1, %v1447_v56, %v1263_v9  ;;  %v1450_v32 = vsel %vm597_vm4, %v3049_v8, %v1209_v13  ;;  %v877_v8 = vld [vmem:[#allocation2 + $0x3a] sm:$0xff]  ;;  %v898_v9 = vpack.c.bf16 %v882_v6, %v882_v6 }
 0x1cd   : > { %v1486_v63 = vsel %vm1405_vm2, %v1465_v10, %v1319_v3  ;;  %v893_v40 = vpack.c.bf16 %v877_v8, %v877_v8  ;;  %v899_v10 = vpack.c.bf16 %v883_v7, %v883_v7  ;;  %v1793_v8 = vpop.f32.mrf.mxu3 }
 0x1ce   : > { %1748 = vmatmul.bf16.gmra.mxu2 %v1486_v63 }
 0x1cf   : > { %v1341_v42 = vunpack.c.l.b16 %v893_v40 }
 0x1d2   : > { %v1115_v24 = vpop.permute.xlu2 %1114 }
 0x1d3   : > { %v1057_v12 = vpop.permute.xlu1 %1056  ;;  %v1003_v23 = vpop.permute.xlu0 %1002 }
 0x1d4   : > { %v1402_v14 = vsel %vm1388_vm1, %v1384_v38, %v1057_v12  ;;  %v1387_v17 = vsel %vm597_vm4, %v3028_v58, %v1003_v23  ;;  %v1346_v38 = vunpack.c.l.b16 %v898_v9  ;;  %v1347_v12 = vunpack.c.l.b16 %v899_v10 }
 0x1d5   : > { %v1425_v18 = vsel %vm1405_vm2, %v1402_v14, %v1113_v11 }
 0x1d6   : > { %1704 = vmatmul.bf16.gmra.mxu1 %v1425_v18  ;;  %v1359_v18 = vpack.c.b16 %v1347_v12, %v1346_v38 }
 0x1da   : > { %v1323_v30 = vpop.permute.xlu2 %1322 }
 0x1db   : > { %v1265_v57 = vpop.permute.xlu1 %1264  ;;  %v1211_v28 = vpop.permute.xlu0 %1210 }
 0x1dc   : > { %v1467_v21 = vsel %vm1388_vm1, %v1450_v32, %v1265_v57  ;;  %v1453_v29 = vsel %vm597_vm4, %v3077_v61, %v1211_v28  ;;  %v1356_v61 = vpack.c.b16 %v1341_v42, %v1340_v41  ;;  %v2258_v42 = vld [vmem:[%s3324_s3] sm:$0xff] }
 0x1dd   : > { %v1489_v22 = vsel %vm1405_vm2, %v1467_v21, %v1321_v20 }
 0x1de   : > { %1753 = vmatmul.bf16.gmra.mxu2 %v1489_v22  ;;  %v2259_v22 = vld [vmem:[%s3324_s3 + $0x8] sm:$0xff] }
 0x1df   : > { %1887 = vmatpush.bf16.msrb.mxu3 %v2259_v22 }
 0x1e3   : > { %v1059_v25 = vpop.permute.xlu1 %1058  ;;  %1888 = vmatpush.bf16.msrb.mxu3 %v2258_v42 }
 0x1e4   : > { %v1404_v26 = vsel %vm1388_vm1, %v1387_v17, %v1059_v25 }
 0x1e5   : > { %v1428_v27 = vsel %vm1405_vm2, %v1404_v26, %v1115_v24 }
 0x1e6   : > { %1709 = vmatmul.bf16.gmra.mxu1 %v1428_v27 }
 0x1e9   : > { %v1675_v31 = vpop.f32.mrf.mxu1 }
 0x1ea   : > { %v1676_v47 = vadd.f32 %v3145_v45, %v1675_v31 }
 0x1eb   : > { %v1267_v19 = vpop.permute.xlu1 %1266 }
 0x1ec   : > { %v1469_v34 = vsel %vm1388_vm1, %v1453_v29, %v1267_v19 }
 0x1ed   : > { %v1492_v58 = vsel %vm1405_vm2, %v1469_v34, %v1323_v30  ;;  %v1795_v34 = vpop.f32.mrf.mxu3 }
 0x1ee   : > { %1758 = vmatmul.bf16.gmra.mxu2 %v1492_v58 }
 0x1f1   : > { %v1677_v46 = vpop.f32.mrf.mxu1 }
 0x1f2   : > { %v1678_v53 = vadd.f32 %v3145_v45, %v1677_v46 }
 0x1f5   : > { %v1798_v44 = vpop.f32.mrf.mxu3 }
 0x1f6   : > { %2200 = vmatmul.msk.bf16.vlgmr.msrb.gmra.mxu1 %vm597_vm4, %v1356_v61 }
 0x1f9   : > { %v1724_v51 = vpop.f32.mrf.mxu2 }
 0x1fa   : > { %v3149_v39 = vadd.f32 %v1724_v51, %v1676_v47  ;;  %v1680_v54 = vpop.f32.mrf.mxu1 }
 0x1fb   : > { %v1681_v4 = vadd.f32 %v3145_v45, %v1680_v54 }
 0x1fe   : > { %2201 = vmatmul.msk.bf16.vlgmr.msrb.gmra.mxu2 %vm597_vm4, %v1357_v52 }
 0x201   : > { %v1726_v55 = vpop.f32.mrf.mxu2 }
 0x202   : > { %v3153_v60 = vadd.f32 %v1726_v55, %v1678_v53  ;;  %v1682_v1 = vpop.f32.mrf.mxu1  ;;  %v1800_v55 = vpop.f32.mrf.mxu3 }
 0x203   : > { %v1683_v63 = vadd.f32 %v3145_v45, %v1682_v1 }
 0x20e   : > { %2202 = vmatmul.msk.bf16.gmra.mxu2 %vm597_vm4, %v1358_v2  ;;  %v1803_v2 = vpop.f32.mrf.mxu3 }
 0x210   : > { %v1729_v3 = vpop.f32.mrf.mxu2 }
 0x211   : > { %v3157_v5 = vadd.f32 %v1729_v3, %v1681_v4 }
 0x212   : > { %v1685_v56 = vpop.f32.mrf.mxu1 }
 0x213   : > { %v1686_v20 = vadd.f32 %v3145_v45, %v1685_v56 }
 0x218   : > { %v1731_v11 = vpop.f32.mrf.mxu2 }
 0x219   : > { %v3160_v13 = vadd.f32 %v1731_v11, %v1683_v63  ;;  %v1805_v63 = vpop.f32.mrf.mxu3 }
 0x21a   : > { %v1687_v14 = vpop.f32.mrf.mxu1 }
 0x21b   : > { %v1688_v23 = vadd.f32 %v3145_v45, %v1687_v14 }
 0x21e   : > { %2203 = vmatmul.msk.bf16.gmra.mxu2 %vm597_vm4, %v1359_v18 }
 0x220   : > { %v1734_v32 = vpop.f32.mrf.mxu2 }
 0x221   : > { %v3164_v57 = vadd.f32 %v1734_v32, %v1686_v20 }
 0x222   : > { %v1690_v21 = vpop.f32.mrf.mxu1 }
 0x223   : > { %v1691_v26 = vadd.f32 %v3145_v45, %v1690_v21 }
 0x228   : > { %v1736_v24 = vpop.f32.mrf.mxu2 }
 0x229   : > { %v3170_v17 = vadd.f32 %v1736_v24, %v1688_v23  ;;  %v1808_v24 = vpop.f32.mrf.mxu3 }
 0x22a   : > { %v1692_v25 = vpop.f32.mrf.mxu1 }
 0x22b   : > { %v1693_v29 = vadd.f32 %v3145_v45, %v1692_v25 }
 0x230   : > { %v1739_v27 = vpop.f32.mrf.mxu2 }
 0x231   : > { %v3173_v28 = vadd.f32 %v1739_v27, %v1691_v26 }
 0x232   : > { %v1695_v15 = vpop.f32.mrf.mxu1 }
 0x233   : > { %v1696_v37 = vadd.f32 %v3145_v45, %v1695_v15 }
 0x238   : > { %v1741_v19 = vpop.f32.mrf.mxu2 }
 0x239   : > { %v3176_v30 = vadd.f32 %v1741_v19, %v1693_v29 }
 0x23a   : > { %v1697_v31 = vpop.f32.mrf.mxu1 }
 0x23b   : > { %v1698_v43 = vadd.f32 %v3145_v45, %v1697_v31 }
 0x241   : > { %v1744_v40 = vpop.f32.mrf.mxu2 }
 0x242   : > { %v1745_v58 = vadd.f32 %v1744_v40, %v1696_v37 }
 0x243   : > { %v1700_v41 = vpop.f32.mrf.mxu1 }
 0x244   : > { %v1794_v36 = vadd.f32 %v1793_v8, %v1745_v58  ;;  %v1701_v51 = vadd.f32 %v3145_v45, %v1700_v41 }
 0x246   : > { %v1821_v48 = vmax.f32 %v1794_v36, 0.0 }
 0x249   : > { %v1746_v61 = vpop.f32.mrf.mxu2 }
 0x24a   : > { %v1747_v35 = vadd.f32 %v1746_v61, %v1698_v43 }
 0x24b   : > { %v1702_v46 = vpop.f32.mrf.mxu1 }
 0x24c   : > { %v1796_v47 = vadd.f32 %v1795_v34, %v1747_v35  ;;  %v1703_v16 = vadd.f32 %v3145_v45, %v1702_v46  ;;  %v1810_v34 = vpop.f32.mrf.mxu3 }
 0x24e   : > { %v1822_v50 = vmax.f32 %v1796_v47, 0.0 }
 0x250   : > { %v3184_v52 = vpack.c.bf16 %v1822_v50, %v1821_v48 }
 0x251   : > { %v1749_v53 = vpop.f32.mrf.mxu2 }
 0x252   : > { %v1750_v54 = vadd.f32 %v1749_v53, %v1701_v51 }
 0x253   : > { %v1705_v59 = vpop.f32.mrf.mxu1 }
 0x254   : > { %v1799_v0 = vadd.f32 %v1798_v44, %v1750_v54  ;;  %v1706_v6 = vadd.f32 %v3145_v45, %v1705_v59 }
 0x256   : > { %v1823_v4 = vmax.f32 %v1799_v0, 0.0 }
 0x259   : > { %v1751_v62 = vpop.f32.mrf.mxu2 }
 0x25a   : > { %v1752_v33 = vadd.f32 %v1751_v62, %v1703_v16 }
 0x25b   : > { %v1707_v49 = vpop.f32.mrf.mxu1 }
 0x25c   : > { %v1801_v1 = vadd.f32 %v1800_v55, %v1752_v33  ;;  %v1708_v11 = vadd.f32 %v3145_v45, %v1707_v49 }
 0x25e   : > { %v1824_v3 = vmax.f32 %v1801_v1, 0.0 }
 0x260   : > { %v1834_v7 = vpack.c.bf16 %v1824_v3, %v1823_v4 }
 0x261   : > { %v1754_v56 = vpop.f32.mrf.mxu2 }
 0x262   : > { %v1755_v9 = vadd.f32 %v1754_v56, %v1706_v6  ;;  %v2382_v6 = vld [vmem:[%s2734_s27 + $0x18] sm:$0xff] }
 0x263   : > { %v1710_v10 = vpop.f32.mrf.mxu1 }
 0x264   : > { %v1804_v12 = vadd.f32 %v1803_v2, %v1755_v9  ;;  %v1711_v22 = vadd.f32 %v3145_v45, %v1710_v10 }
 0x266   : > { %v1825_v32 = vmax.f32 %v1804_v12, 0.0 }
 0x269   : > { %v1756_v38 = vpop.f32.mrf.mxu2 }
 0x26a   : > { %v1757_v14 = vadd.f32 %v1756_v38, %v1708_v11 }
 0x26b   : > { %v1712_v18 = vpop.f32.mrf.mxu1 }
 0x26c   : > { %v1806_v20 = vadd.f32 %v1805_v63, %v1757_v14  ;;  %v1713_v15 = vadd.f32 %v3145_v45, %v1712_v18  ;;  %v2383_v63 = vld [vmem:[%s2734_s27 + $0x20] sm:$0xff]  ;;  %v2384_v18 = vld [vmem:[%s2734_s27 + $0x28] sm:$0xff] }
 0x26e   : > { %v1826_v21 = vmax.f32 %v1806_v20, 0.0 }
 0x270   : > { %v1835_v23 = vpack.c.bf16 %v1826_v21, %v1825_v32 }
 0x271   : > { %v1759_v25 = vpop.f32.mrf.mxu2 }
 0x272   : > { %v1760_v26 = vadd.f32 %v1759_v25, %v1711_v22 }
 0x273   : > { %v1773_v27 = vpop.f32.mrf.mxu1 }
 0x274   : > { %v1809_v29 = vadd.f32 %v1808_v24, %v1760_v26  ;;  %v1774_v19 = vadd.f32 %v1773_v27, %v3149_v39 }
 0x276   : > { %v1827_v41 = vmax.f32 %v1809_v29, 0.0  ;;  %v1813_v42 = vmax.f32 %v1774_v19, 0.0 }
 0x279   : > { %v1761_v8 = vpop.f32.mrf.mxu2 }
 0x27a   : > { %v1762_v31 = vadd.f32 %v1761_v8, %v1713_v15  ;;  %v2386_v15 = vld [vmem:[%s2734_s27 + $0x38] sm:$0xff] }
 0x27b   : > { %v1775_v37 = vpop.f32.mrf.mxu1 }
 0x27c   : > { %v1811_v40 = vadd.f32 %v1810_v34, %v1762_v31  ;;  %v1776_v58 = vadd.f32 %v1775_v37, %v3153_v60  ;;  %v2387_v34 = vld [vmem:[%s2734_s27 + $0x40] sm:$0xff] }
 0x27e   : > { %v1828_v43 = vmax.f32 %v1811_v40, 0.0  ;;  %v1814_v44 = vmax.f32 %v1776_v58, 0.0 }
 0x280   : > { %v1829_v61 = vpack.c.bf16 %v1814_v44, %v1813_v42  ;;  %v1836_v36 = vpack.c.bf16 %v1828_v43, %v1827_v41  ;;  %v2388_v42 = vld [vmem:[%s2734_s27 + $0x48] sm:$0xff] }
 0x281   : > { %v1778_v35 = vpop.f32.mrf.mxu2 }
 0x282   : > { %2216 = vmatmul.msk.bf16.vlgmr.msrb.gmra.mxu3 %vm597_vm4, %v1829_v61  ;;  %v1779_v45 = vadd.f32 %v1778_v35, %v3157_v5  ;;  %v2389_v35 = vld [vmem:[%s2734_s27 + $0x50] sm:$0xff] }
 0x284   : > { %v1815_v47 = vmax.f32 %v1779_v45, 0.0 }
 0x289   : > { %v1780_v46 = vpop.f32.mrf.mxu2 }
 0x28a   : > { %v1781_v39 = vadd.f32 %v1780_v46, %v3160_v13 }
 0x28c   : > { %v1816_v48 = vmax.f32 %v1781_v39, 0.0 }
 0x28e   : > { %v1830_v50 = vpack.c.bf16 %v1816_v48, %v1815_v47  ;;  %v2390_v48 = vld [vmem:[%s2734_s27 + $0x58] sm:$0xff] }
 0x291   : > { %v1783_v51 = vpop.f32.mrf.mxu2 }
 0x292   : > { %2217 = vmatmul.msk.bf16.gmra.mxu3 %vm597_vm4, %v1830_v50  ;;  %v1784_v60 = vadd.f32 %v1783_v51, %v3164_v57 }
 0x294   : > { %v1817_v55 = vmax.f32 %v1784_v60, 0.0 }
 0x299   : > { %v1785_v53 = vpop.f32.mrf.mxu2 }
 0x29a   : > { %v1786_v54 = vadd.f32 %v1785_v53, %v3170_v17  ;;  %v3211_v17 = vld [vmem:[%s3327_s6] ss:$0 sm:$0xff] }
 0x29c   : > { %v1818_v59 = vmax.f32 %v1786_v54, 0.0  ;;  %v2391_v54 = vld [vmem:[%s2734_s27 + $0x60] sm:$0xff] }
 0x29e   : > { %v1831_v16 = vpack.c.bf16 %v1818_v59, %v1817_v55 }
 0x2a1   : > { %v1788_v62 = vpop.f32.mrf.mxu2 }
 0x2a2   : > { %2218 = vmatmul.msk.bf16.gmra.mxu3 %vm597_vm4, %v1831_v16  ;;  %v1789_v5 = vadd.f32 %v1788_v62, %v3173_v28 }
 0x2a4   : > { %v1819_v33 = vmax.f32 %v1789_v5, 0.0  ;;  %v2392_v5 = vld [vmem:[%s2734_s27 + $0x68] sm:$0xff] }
 0x2a9   : > { %v1790_v13 = vpop.f32.mrf.mxu2 }
 0x2aa   : > { %v1791_v0 = vadd.f32 %v1790_v13, %v3176_v30 }
 0x2ac   : > { %v1820_v49 = vmax.f32 %v1791_v0, 0.0 }
 0x2ae   : > { %v1832_v57 = vpack.c.bf16 %v1820_v49, %v1819_v33 }
 0x2b2   : > { %2219 = vmatmul.msk.bf16.gmra.mxu3 %vm597_vm4, %v1832_v57  ;;  %v2393_v57 = vld [vmem:[%s2734_s27 + $0x70] sm:$0xff] }
 0x2c2   : > { %2220 = vmatmul.msk.bf16.gmra.mxu3 %vm597_vm4, %v3184_v52  ;;  %v2381_v52 = vld [vmem:[%s2734_s27 + $0x10] sm:$0xff] }
 0x2d2   : > { %2221 = vmatmul.msk.bf16.gmra.mxu3 %vm597_vm4, %v1834_v7 }
 0x2e2   : > { %2222 = vmatmul.msk.bf16.gmra.mxu3 %vm597_vm4, %v1835_v23  ;;  %v2385_v23 = vld [vmem:[%s2734_s27 + $0x30] sm:$0xff] }
 0x2f2   : > { %2223 = vmatmul.msk.bf16.gmra.mxu3 %vm597_vm4, %v1836_v36 }
 0x305   : > { %v1890_v28 = vpop.f32.mrf.mxu3 }
 0x306   : > { %v1891_v30 = vadd.f32 %v3211_v17, %v1890_v28 }
 0x308   : > { %v1930_v1 = vadd.f32 %v2381_v52, %v1891_v30 }
 0x30a   : > { %v1946_v2 = vmax.f32 %v1930_v1, 0.0 }
 0x30c   : > { %1962 = vst [vmem:[%s3218_s24] sm:$0xff] %v1946_v2  ;;  %v2394_v2 = vld [vmem:[%s2734_s27 + $0x78] sm:$0xff] }
 0x30d   : > { %v1892_v4 = vpop.f32.mrf.mxu3 }
 0x30e   : > { %v1893_v3 = vadd.f32 %v3211_v17, %v1892_v4 }
 0x310   : > { %v1931_v7 = vadd.f32 %v2382_v6, %v1893_v3 }
 0x312   : > { %v1947_v56 = vmax.f32 %v1931_v7, 0.0 }
 0x314   : > { %1963 = vst [vmem:[%s3218_s24 + $0x8] sm:$0xff] %v1947_v56  ;;  %v2395_v56 = vld [vmem:[%s2734_s27 + $0x80] sm:$0xff] }
 0x315   : > { %v1895_v9 = vpop.f32.mrf.mxu3 }
 0x316   : > { %v1896_v10 = vadd.f32 %v3211_v17, %v1895_v9 }
 0x318   : > { %v1932_v11 = vadd.f32 %v2383_v63, %v1896_v10 }
 0x31a   : > { %v1948_v38 = vmax.f32 %v1932_v11, 0.0 }
 0x31c   : > { %1964 = vst [vmem:[%s3218_s24 + $0x10] sm:$0xff] %v1948_v38  ;;  %v2396_v38 = vld [vmem:[%s2734_s27 + $0x88] sm:$0xff] }
 0x31d   : > { %v1897_v12 = vpop.f32.mrf.mxu3 }
 0x31e   : > { %v1898_v14 = vadd.f32 %v3211_v17, %v1897_v12 }
 0x320   : > { %v1933_v20 = vadd.f32 %v2384_v18, %v1898_v14 }
 0x322   : > { %v1949_v32 = vmax.f32 %v1933_v20, 0.0 }
 0x324   : > { %1965 = vst [vmem:[%s3218_s24 + $0x18] sm:$0xff] %v1949_v32 }
 0x325   : > { %v1900_v21 = vpop.f32.mrf.mxu3 }
 0x326   : > { %v1901_v22 = vadd.f32 %v3211_v17, %v1900_v21 }
 0x328   : > { %v1934_v24 = vadd.f32 %v2385_v23, %v1901_v22 }
 0x32a   : > { %v1950_v25 = vmax.f32 %v1934_v24, 0.0 }
 0x32c   : > { %1966 = vst [vmem:[%s3218_s24 + $0x20] sm:$0xff] %v1950_v25 }
 0x32d   : > { %v1902_v26 = vpop.f32.mrf.mxu3 }
 0x32e   : > { %v1903_v27 = vadd.f32 %v3211_v17, %v1902_v26 }
 0x330   : > { %v1935_v8 = vadd.f32 %v2386_v15, %v1903_v27 }
 0x332   : > { %v1951_v29 = vmax.f32 %v1935_v8, 0.0 }
 0x334   : > { %1967 = vst [vmem:[%s3218_s24 + $0x28] sm:$0xff] %v1951_v29 }
 0x335   : > { %v1905_v19 = vpop.f32.mrf.mxu3 }
 0x336   : > { %v1906_v31 = vadd.f32 %v3211_v17, %v1905_v19 }
 0x338   : > { %v1936_v37 = vadd.f32 %v2387_v34, %v1906_v31 }
 0x33a   : > { %v1952_v40 = vmax.f32 %v1936_v37, 0.0 }
 0x33c   : > { %1968 = vst [vmem:[%s3218_s24 + $0x30] sm:$0xff] %v1952_v40 }
 0x33d   : > { %v1907_v58 = vpop.f32.mrf.mxu3 }
 0x33e   : > { %v1908_v41 = vadd.f32 %v3211_v17, %v1907_v58 }
 0x340   : > { %v1937_v43 = vadd.f32 %v2388_v42, %v1908_v41 }
 0x342   : > { %v1953_v44 = vmax.f32 %v1937_v43, 0.0 }
 0x344   : > { %1969 = vst [vmem:[%s3218_s24 + $0x38] sm:$0xff] %v1953_v44 }
 0x345   : > { %v1910_v61 = vpop.f32.mrf.mxu3 }
 0x346   : > { %v1911_v36 = vadd.f32 %v3211_v17, %v1910_v61 }
 0x348   : > { %v1938_v45 = vadd.f32 %v2389_v35, %v1911_v36 }
 0x34a   : > { %v1954_v46 = vmax.f32 %v1938_v45, 0.0 }
 0x34c   : > { %1970 = vst [vmem:[%s3218_s24 + $0x40] sm:$0xff] %v1954_v46 }
 0x34d   : > { %v1912_v39 = vpop.f32.mrf.mxu3 }
 0x34e   : > { %v1913_v47 = vadd.f32 %v3211_v17, %v1912_v39 }
 0x350   : > { %v1939_v50 = vadd.f32 %v2390_v48, %v1913_v47 }
 0x352   : > { %v1955_v51 = vmax.f32 %v1939_v50, 0.0 }
 0x354   : > { %1971 = vst [vmem:[%s3218_s24 + $0x48] sm:$0xff] %v1955_v51 }
 0x355   : > { %v1915_v60 = vpop.f32.mrf.mxu3 }
 0x356   : > { %v1916_v53 = vadd.f32 %v3211_v17, %v1915_v60 }
 0x358   : > { %v1940_v55 = vadd.f32 %v2391_v54, %v1916_v53 }
 0x35a   : > { %v1956_v59 = vmax.f32 %v1940_v55, 0.0 }
 0x35c   : > { %1972 = vst [vmem:[%s3218_s24 + $0x50] sm:$0xff] %v1956_v59 }
 0x35d   : > { %v1917_v16 = vpop.f32.mrf.mxu3 }
 0x35e   : > { %v1918_v62 = vadd.f32 %v3211_v17, %v1917_v16 }
 0x360   : > { %v1941_v13 = vadd.f32 %v2392_v5, %v1918_v62 }
 0x362   : > { %v1957_v0 = vmax.f32 %v1941_v13, 0.0 }
 0x364   : > { %1973 = vst [vmem:[%s3218_s24 + $0x58] sm:$0xff] %v1957_v0 }
 0x365   : > { %v1920_v33 = vpop.f32.mrf.mxu3 }
 0x366   : > { %v1921_v49 = vadd.f32 %v3211_v17, %v1920_v33 }
 0x368   : > { %v1942_v28 = vadd.f32 %v2393_v57, %v1921_v49 }
 0x36a   : > { %v1958_v30 = vmax.f32 %v1942_v28, 0.0 }
 0x36c   : > { %1974 = vst [vmem:[%s3218_s24 + $0x60] sm:$0xff] %v1958_v30 }
 0x36d   : > { %v1922_v52 = vpop.f32.mrf.mxu3 }
 0x36e   : > { %v1923_v1 = vadd.f32 %v3211_v17, %v1922_v52 }
 0x370   : > { %v1943_v4 = vadd.f32 %v2394_v2, %v1923_v1 }
 0x372   : > { %v1959_v3 = vmax.f32 %v1943_v4, 0.0 }
 0x374   : > { %1975 = vst [vmem:[%s3218_s24 + $0x68] sm:$0xff] %v1959_v3 }
 0x375   : > { %v1925_v6 = vpop.f32.mrf.mxu3 }
 0x376   : > { %v1926_v7 = vadd.f32 %v3211_v17, %v1925_v6 }
 0x378   : > { %v1944_v9 = vadd.f32 %v2395_v56, %v1926_v7 }
 0x37a   : > { %v1960_v10 = vmax.f32 %v1944_v9, 0.0 }
 0x37c   : > { %1976 = vst [vmem:[%s3218_s24 + $0x70] sm:$0xff] %v1960_v10 }
 0x37d   : > { %v1927_v63 = vpop.f32.mrf.mxu3 }
 0x37e   : > { %v1928_v11 = vadd.f32 %v3211_v17, %v1927_v63 }
 0x380   : > { %v1945_v12 = vadd.f32 %v2396_v38, %v1928_v11 }
 0x382   : > { %v1961_v14 = vmax.f32 %v1945_v12, 0.0 }
 0x384   : > { %1977 = vst [vmem:[%s3218_s24 + $0x78] sm:$0xff] %v1961_v14 }
 0x385   : > { %2454 = shalt.err (!%p2451_p0)
}
 0x386   : > { %s2557_s17 = smov 128   ;;  %s2558_s24 = smov 8  }
 0x387   : > { %2270 = dma.vmem_to_hbm [thread:$0]  (%p2681_p12), %s1995_s30, 2048, %s1997_s8, %s1979_s20, %s2557_s17, %s2557_s17, %s2558_s24  }
 0x388 PF: > { %s3367_s26 = sld [smem:[#allocation9_spill]]  ;;  %p2281_p1 = scmp.ge.s32.totalorder %s2549_s11, 2 }
 0x38a   : > { %p2277_p4 = pnand %p2281_p1, %p2694_p2 }
 0x38c   : > { %p2278_p5 = pneg %p2277_p4 }
 0x38e   : > { %s2011_s14 = sand.u32 1, %s3367_s26  }
 0x38f   : > { %s2012_s12 = scalar_lea.sflag [#allocation5], %s2011_s14 }
 0x390   : > { %2504 = dma.done.wait (%p2278_p5), %s2012_s12, 2048  }
 0x391   : > { %2506 = vsyncadd (%p2278_p5), %s2012_s12, 4294965248  ;;  %s23_s11 = sadd.s32 1, %s2549_s11   ;;  %s3368_s10 = sld [smem:[#allocation10_spill]] }
 0x392   : > { %p20_p6 = scmp.ge.s32.totalorder %s23_s11, 6   ;;  %s3369_s26 = sld [smem:[#allocation17_spill]] }
 0x393   : > { %s3370_s23 = sld [smem:[#allocation11_spill]]  ;;  %s3376_s24 = smov %s2513_s25 }
 0x394   : > { %s3371_s29 = sld [smem:[#allocation16_spill]]  ;;  %s3378_s27 = smov %s2525_s28 }
 0x395   : > { %s3372_s30 = sld [smem:[#allocation12_spill]] }
 0x396   : > { %s3373_s8 = sld [smem:[#allocation13_spill]] }
 0x397   : > { %s3374_s9 = sld [smem:[#allocation14_spill]]  ;;  %s3377_s25 = smov %s3368_s10 }
 0x398   : > { %s3375_s21 = sld [smem:[#allocation15_spill]] }
 0x399   : > { %s3379_s28 = smov %s3370_s23 }
 0x39a   :  { %22 = sbr.rel (!%p20_p6) target bundleno = 9 (0x9), region = 96 }
 0x39e   : > { %s3380_s10 = smov %s3375_s21 }
 0x39f   :  { %2018 = vsyncpa [#allocation4], 1 }
 0x3a0   :  { %2020 = vsyncpa [#allocation4 + $0x1], 1 }
 0x3a1   :  { %2021 = vsyncpa [#allocation5], 1 }
 0x3a2   :  { %2023 = vsyncpa [#allocation5 + $0x1], 1 }

</bundles_post_ra>
